<compile_context>
chip_gen: v7x
topology: tpu7x:2x2x1
jax: 0.10.0
libtpu: 0.0.40
codegen_flags: <defaults>
</compile_context>

<pallas_src>
import jax
import jax.numpy as jnp
from jax import lax
from jax.experimental import pallas as pl
from jax.experimental.pallas import tpu as pltpu

INPUT_SIZE = 768
HIDDEN_SIZE = 128
NUM_LAYERS = 2          # the two stacked layers are hard-coded in the kernel
OUTPUT_SIZE = 85

OUT_PAD = 128           # lane-dense padded logits width (>= OUTPUT_SIZE)
NEG_BIG = -1e30         # -inf-safe fill for padded logit columns


def _round_up(x, m):
    return (x + m - 1) // m * m


def _pick_batch_tile(b_pad):
    """Largest reasonable batch tile that divides b_pad; keep >=2 tiles when
    the batch allows so the parallel batch axis can shard across TCs (v7x)."""
    if b_pad <= 8:
        return 8
    bt = min(64, max(8, (b_pad // 2) // 8 * 8))
    while b_pad % bt != 0:
        bt -= 8
    return bt


# --------------------------------------------------------------------------
# Fused kernel: per-tile input projection + recurrence + lengths-1 gather
#               + fc + log_softmax
# --------------------------------------------------------------------------
def rnn_fused_kernel(maxlen_ref,                         # SMEM [n_b] i32 (prefetch)
                     len_ref, x_ref, wih0_ref, b0_ref,   # inputs
                     whh0_ref, wih1_ref, whh1_ref, b1_ref,
                     wfc_ref, bfc_ref,
                     out_ref,                            # output [bt, OUT_PAD]
                     xp_ref, h0_ref, h1_ref, last_ref):  # VMEM scratch
    # len_ref:[bt,1] i32, x_ref:[TT*bt, D], wih0_ref:[D,H], b0/b1:[1,H],
    # whh0/wih1/whh1:[H,H], wfc:[H,OUT_PAD], bfc:[1,OUT_PAD]
    # xp_ref:[TT*bt,H], h0/h1/last:[bt,H] persist across the time grid axis.
    b_blk = pl.program_id(0)
    t_blk = pl.program_id(1)
    b_tile = h0_ref.shape[0]
    tt = xp_ref.shape[0] // b_tile
    t_base = t_blk * tt

    @pl.when(t_blk == 0)
    def _init():
        h0_ref[...] = jnp.zeros_like(h0_ref)
        h1_ref[...] = jnp.zeros_like(h1_ref)
        last_ref[...] = jnp.zeros_like(last_ref)

    # Skip time tiles entirely beyond the longest sequence in this batch tile.
    @pl.when(t_base < maxlen_ref[b_blk])
    def _compute():
        # hoisted layer-0 input projection for this tile: one big MXU matmul
        xp_ref[...] = (jnp.dot(x_ref[...], wih0_ref[...],
                               preferred_element_type=jnp.float32)
                       + b0_ref[...])

        len_m1 = len_ref[...] - 1                        # [bt, 1] int32

        def step(s, carry):
            h0, h1, last = carry
            row = pl.multiple_of(s * b_tile, b_tile)
            xp_s = xp_ref[pl.ds(row, b_tile), :]
            # layer-1 half that depends only on the previous h1 (off the
            # critical path -> overlaps the layer-0 matmul + tanh)
            p1 = jnp.dot(h1, whh1_ref[...], preferred_element_type=jnp.float32)
            # layer 0: only the recurrent dot remains
            h0n = jnp.tanh(xp_s + jnp.dot(h0, whh0_ref[...],
                                          preferred_element_type=jnp.float32))
            # layer 1
            h1n = jnp.tanh(jnp.dot(h0n, wih1_ref[...],
                                   preferred_element_type=jnp.float32)
                           + p1 + b1_ref[...])
            # packed-sequence gather: keep top-layer state at t == length-1
            last = jnp.where(len_m1 == (t_base + s), h1n, last)
            return h0n, h1n, last

        carry = (h0_ref[...], h1_ref[...], last_ref[...])
        h0, h1, last = lax.fori_loop(0, tt, step, carry, unroll=min(8, tt))
        h0_ref[...] = h0
        h1_ref[...] = h1
        last_ref[...] = last

    @pl.when(t_blk == pl.num_programs(1) - 1)
    def _final():
        logits = (jnp.dot(last_ref[...], wfc_ref[...],
                          preferred_element_type=jnp.float32) + bfc_ref[...])
        m = jnp.max(logits, axis=1, keepdims=True)
        s = logits - m
        lse = jnp.log(jnp.sum(jnp.exp(s), axis=1, keepdims=True))
        out_ref[...] = s - lse                           # lane-dense [bt, 128]


# --------------------------------------------------------------------------
# Wrapper
# --------------------------------------------------------------------------
def simple_rnn_forward(x, lengths, p, *, time_tile=64, batch_tile=None):
    """x: [B, T, input_size] float32 (batch_first), lengths: [B] int."""
    B, T, D = x.shape
    H = HIDDEN_SIZE

    B_pad = _round_up(max(B, 8), 8)
    bt = batch_tile if batch_tile is not None else _pick_batch_tile(B_pad)
    n_b = B_pad // bt
    TT = min(time_tile, _round_up(T, 8))
    T_pad = _round_up(T, TT)
    n_t = T_pad // TT

    # Pad batch/time; padded rows get length 1 and are sliced off, padded
    # timesteps can never satisfy t == length-1, so results are exact.
    xf = x.astype(jnp.float32)
    x_p = jnp.pad(xf, ((0, B_pad - B), (0, T_pad - T), (0, 0)))
    # layout [n_b, T_pad, bt, D] -> flat 2-D so each (batch_tile, time_tile)
    # grid point is one contiguous lane-dense [TT*bt, D] block (no in-kernel
    # reshape).
    x2d = jnp.transpose(x_p.reshape(n_b, bt, T_pad, D),
                        (0, 2, 1, 3)).reshape(n_b * T_pad * bt, D)

    len_pad = jnp.pad(lengths.astype(jnp.int32), (0, B_pad - B),
                      constant_values=1)
    len_col = len_pad.reshape(B_pad, 1)
    maxlen = jnp.max(len_pad.reshape(n_b, bt), axis=1).astype(jnp.int32)

    # weight prep (PyTorch layouts -> right-multiply layouts)
    wih0T = p["wih0"].T                                   # (D, H)
    b0_row = p["b0"].reshape(1, H)
    whh0T = p["whh0"].T                                   # (H, H)
    wih1T = p["wih1"].T                                   # (H, H)
    whh1T = p["whh1"].T                                   # (H, H)
    b1_row = p["b1"].reshape(1, H)
    wfcT = jnp.zeros((H, OUT_PAD), jnp.float32).at[:, :OUTPUT_SIZE].set(p["wfc"].T)
    bfc = jnp.full((1, OUT_PAD), NEG_BIG,
                   jnp.float32).at[0, :OUTPUT_SIZE].set(p["bfc"])

    # VMEM budget sized from the (double-buffered) x tile + weights/scratch;
    # stays within v7x's 64 MiB for default tiles.
    x_block_bytes = TT * bt * D * 4
    vmem_limit = int(min(96 * 2**20, max(32 * 2**20, 3 * x_block_bytes + 16 * 2**20)))

    out_pad = pl.pallas_call(
        rnn_fused_kernel,
        out_shape=jax.ShapeDtypeStruct((B_pad, OUT_PAD), jnp.float32),
        grid_spec=pltpu.PrefetchScalarGridSpec(
            num_scalar_prefetch=1,
            grid=(n_b, n_t),
            in_specs=[
                pl.BlockSpec((bt, 1), lambda b, t, ml: (b, 0)),
                pl.BlockSpec((TT * bt, D), lambda b, t, ml: (b * n_t + t, 0)),
                pl.BlockSpec((D, H), lambda b, t, ml: (0, 0)),
                pl.BlockSpec((1, H), lambda b, t, ml: (0, 0)),
                pl.BlockSpec((H, H), lambda b, t, ml: (0, 0)),
                pl.BlockSpec((H, H), lambda b, t, ml: (0, 0)),
                pl.BlockSpec((H, H), lambda b, t, ml: (0, 0)),
                pl.BlockSpec((1, H), lambda b, t, ml: (0, 0)),
                pl.BlockSpec((H, OUT_PAD), lambda b, t, ml: (0, 0)),
                pl.BlockSpec((1, OUT_PAD), lambda b, t, ml: (0, 0)),
            ],
            out_specs=pl.BlockSpec((bt, OUT_PAD), lambda b, t, ml: (b, 0)),
            scratch_shapes=[
                pltpu.VMEM((TT * bt, H), jnp.float32),   # projected x tile
                pltpu.VMEM((bt, H), jnp.float32),        # h0
                pltpu.VMEM((bt, H), jnp.float32),        # h1
                pltpu.VMEM((bt, H), jnp.float32),        # last (gathered)
            ],
        ),
        compiler_params=pltpu.CompilerParams(
            dimension_semantics=("parallel", "arbitrary"),
            vmem_limit_bytes=vmem_limit),
    )(maxlen, len_col, x2d, wih0T, b0_row, whh0T, wih1T, whh1T, b1_row,
      wfcT, bfc)

    return out_pad[:B, :OUTPUT_SIZE]


# --------------------------------------------------------------------------
# Parameters + pure-JAX reference (matches the PyTorch module)
# --------------------------------------------------------------------------
def init_params(key):
    ks = jax.random.split(key, 10)
    bound = 1.0 / jnp.sqrt(jnp.float32(HIDDEN_SIZE))
    u = lambda kk, shape: jax.random.uniform(kk, shape, jnp.float32, -bound, bound)
    return {
        # PyTorch nn.RNN shapes: weight_ih_l0 [H, D], weight_hh_l0 [H, H]
        "wih0": u(ks[0], (HIDDEN_SIZE, INPUT_SIZE)),
        "whh0": u(ks[1], (HIDDEN_SIZE, HIDDEN_SIZE)),
        "b0":   u(ks[2], (HIDDEN_SIZE,)) + u(ks[3], (HIDDEN_SIZE,)),  # bias_ih + bias_hh
        "wih1": u(ks[4], (HIDDEN_SIZE, HIDDEN_SIZE)),
        "whh1": u(ks[5], (HIDDEN_SIZE, HIDDEN_SIZE)),
        "b1":   u(ks[6], (HIDDEN_SIZE,)) + u(ks[7], (HIDDEN_SIZE,)),
        # nn.Linear(hidden, output): weight [O, H], bias [O]
        "wfc":  u(ks[8], (OUTPUT_SIZE, HIDDEN_SIZE)),
        "bfc":  u(ks[9], (OUTPUT_SIZE,)),
    }


def reference_forward(x, lengths, p):
    B, T, D = x.shape

    def scan_step(carry, xt):
        h0, h1 = carry
        h0n = jnp.tanh(xt @ p["wih0"].T + h0 @ p["whh0"].T + p["b0"])
        h1n = jnp.tanh(h0n @ p["wih1"].T + h1 @ p["whh1"].T + p["b1"])
        return (h0n, h1n), h1n

    zeros = jnp.zeros((B, HIDDEN_SIZE), jnp.float32)
    _, outs = lax.scan(scan_step, (zeros, zeros), jnp.transpose(x, (1, 0, 2)))
    outs = jnp.transpose(outs, (1, 0, 2))                    # [B, T, H]
    last = outs[jnp.arange(B), lengths - 1]                  # gather at lengths-1
    logits = last @ p["wfc"].T + p["bfc"]
    return jax.nn.log_softmax(logits, axis=1)


if __name__ == "__main__":
    key = jax.random.PRNGKey(0)
    kx, kp, kx2 = jax.random.split(key, 3)
    params = init_params(kp)

    # test 1: exact-tile shapes
    B, T = 2, 8
    x = jax.random.normal(kx, (B, T, INPUT_SIZE), jnp.float32)
    lengths = jnp.array([8, 5], dtype=jnp.int32)
    out = jax.block_until_ready(simple_rnn_forward(x, lengths, params))
    ref = reference_forward(x, lengths, params)
    assert out.shape == (B, OUTPUT_SIZE)
    assert jnp.allclose(out, ref, atol=2e-4, rtol=2e-4), "mismatch vs reference (test 1)"

    # test 2: ragged shapes exercising batch/time padding + dead-tile skip
    B2, T2 = 3, 10
    x2 = jax.random.normal(kx2, (B2, T2, INPUT_SIZE), jnp.float32)
    lengths2 = jnp.array([10, 7, 1], dtype=jnp.int32)
    out2 = jax.block_until_ready(simple_rnn_forward(x2, lengths2, params))
    ref2 = reference_forward(x2, lengths2, params)
    assert out2.shape == (B2, OUTPUT_SIZE)
    assert jnp.allclose(out2, ref2, atol=2e-4, rtol=2e-4), "mismatch vs reference (test 2)"

    print("KERNEL_OK")
</pallas_src>

<mosaic_0001>
module attributes {stable_mosaic.version = 11 : i64} {
  func.func @rnn_fused_kernel(%arg0: i32, %arg1: i32, %arg2: memref<1xi32, #tpu.memory_space<smem>>, %arg3: memref<8x1xi32, #tpu.memory_space<vmem>>, %arg4: memref<64x768xf32, #tpu.memory_space<vmem>>, %arg5: memref<768x128xf32, #tpu.memory_space<vmem>>, %arg6: memref<1x128xf32, #tpu.memory_space<vmem>>, %arg7: memref<128x128xf32, #tpu.memory_space<vmem>>, %arg8: memref<128x128xf32, #tpu.memory_space<vmem>>, %arg9: memref<128x128xf32, #tpu.memory_space<vmem>>, %arg10: memref<1x128xf32, #tpu.memory_space<vmem>>, %arg11: memref<128x128xf32, #tpu.memory_space<vmem>>, %arg12: memref<1x128xf32, #tpu.memory_space<vmem>>, %arg13: memref<8x128xf32, #tpu.memory_space<vmem>>, %arg14: memref<64x128xf32, #tpu.memory_space<vmem>>, %arg15: memref<8x128xf32, #tpu.memory_space<vmem>>, %arg16: memref<8x128xf32, #tpu.memory_space<vmem>>, %arg17: memref<8x128xf32, #tpu.memory_space<vmem>>) attributes {dimension_semantics = [#tpu.dimension_semantics<parallel>, #tpu.dimension_semantics<arbitrary>], iteration_bounds = array<i64: 1, 1>, scalar_prefetch = 1 : i64, scratch_operands = 4 : i64, tpu.core_type = #tpu.core_type<tc>, window_params = [{transform_indices = @transform_0, window_bounds = array<i64: 8, 1>}, {transform_indices = @transform_1, window_bounds = array<i64: 64, 768>}, {pipeline_mode = #tpu.pipeline_mode<synchronous>, transform_indices = @transform_2, window_bounds = array<i64: 768, 128>}, {pipeline_mode = #tpu.pipeline_mode<synchronous>, transform_indices = @transform_3, window_bounds = array<i64: 1, 128>}, {pipeline_mode = #tpu.pipeline_mode<synchronous>, transform_indices = @transform_4, window_bounds = array<i64: 128, 128>}, {pipeline_mode = #tpu.pipeline_mode<synchronous>, transform_indices = @transform_5, window_bounds = array<i64: 128, 128>}, {pipeline_mode = #tpu.pipeline_mode<synchronous>, transform_indices = @transform_6, window_bounds = array<i64: 128, 128>}, {pipeline_mode = #tpu.pipeline_mode<synchronous>, transform_indices = @transform_7, window_bounds = array<i64: 1, 128>}, {pipeline_mode = #tpu.pipeline_mode<synchronous>, transform_indices = @transform_8, window_bounds = array<i64: 128, 128>}, {pipeline_mode = #tpu.pipeline_mode<synchronous>, transform_indices = @transform_9, window_bounds = array<i64: 1, 128>}, {transform_indices = @transform_10, window_bounds = array<i64: 8, 128>}]} {
    %c8_i32 = arith.constant 8 : i32
    %0 = arith.muli %arg1, %c8_i32 : i32
    %c0_i32 = arith.constant 0 : i32
    %1 = arith.cmpi eq, %arg1, %c0_i32 : i32
    %2 = arith.extui %1 : i1 to i32
    %c0_i32_0 = arith.constant 0 : i32
    %3 = arith.cmpi ne, %2, %c0_i32_0 : i32
    scf.if %3 {
      %cst = arith.constant 0.000000e+00 : f32
      %12 = vector.broadcast %cst : f32 to vector<8x128xf32>
      %c0 = arith.constant 0 : index
      %c0_4 = arith.constant 0 : index
      %13 = vector.load %arg15[%c0, %c0_4] : memref<8x128xf32, #tpu.memory_space<vmem>>, vector<8x128xf32>
      tpu.vector_store %arg15[%c0, %c0_4], %12 {strides = array<i32>} : memref<8x128xf32, #tpu.memory_space<vmem>>, vector<8x128xf32>,
      %cst_5 = arith.constant 0.000000e+00 : f32
      %14 = vector.broadcast %cst_5 : f32 to vector<8x128xf32>
      %c0_6 = arith.constant 0 : index
      %c0_7 = arith.constant 0 : index
      %15 = vector.load %arg16[%c0_6, %c0_7] : memref<8x128xf32, #tpu.memory_space<vmem>>, vector<8x128xf32>
      tpu.vector_store %arg16[%c0_6, %c0_7], %14 {strides = array<i32>} : memref<8x128xf32, #tpu.memory_space<vmem>>, vector<8x128xf32>,
      %cst_8 = arith.constant 0.000000e+00 : f32
      %16 = vector.broadcast %cst_8 : f32 to vector<8x128xf32>
      %c0_9 = arith.constant 0 : index
      %c0_10 = arith.constant 0 : index
      %17 = vector.load %arg17[%c0_9, %c0_10] : memref<8x128xf32, #tpu.memory_space<vmem>>, vector<8x128xf32>
      tpu.vector_store %arg17[%c0_9, %c0_10], %16 {strides = array<i32>} : memref<8x128xf32, #tpu.memory_space<vmem>>, vector<8x128xf32>,
    } else {
    }
    %4 = arith.index_cast %arg0 : i32 to index
    %5 = memref.load %arg2[%4] : memref<1xi32, #tpu.memory_space<smem>>
    %6 = arith.cmpi slt, %0, %5 : i32
    %7 = arith.extui %6 : i1 to i32
    %c0_i32_1 = arith.constant 0 : i32
    %8 = arith.cmpi ne, %7, %c0_i32_1 : i32
    scf.if %8 {
      %c0 = arith.constant 0 : index
      %c0_4 = arith.constant 0 : index
      %12 = vector.load %arg4[%c0, %c0_4] : memref<64x768xf32, #tpu.memory_space<vmem>>, vector<64x768xf32>
      %c0_5 = arith.constant 0 : index
      %c0_6 = arith.constant 0 : index
      %13 = vector.load %arg5[%c0_5, %c0_6] : memref<768x128xf32, #tpu.memory_space<vmem>>, vector<768x128xf32>
      %cst = arith.constant dense<0.000000e+00> : vector<64x128xf32>
      %14 = tpu.matmul %12, %13, %cst {dimension_numbers = #tpu.dot_dimension_numbers<[1], [0], [0], [1], [0, 0, 1, 1], [], []>} : vector<64x768xf32>, vector<768x128xf32>, vector<64x128xf32> -> vector<64x128xf32>
      %c0_7 = arith.constant 0 : index
      %c0_8 = arith.constant 0 : index
      %15 = vector.load %arg6[%c0_7, %c0_8] : memref<1x128xf32, #tpu.memory_space<vmem>>, vector<1x128xf32>
      %16 = vector.broadcast %15 : vector<1x128xf32> to vector<64x128xf32>
      %17 = arith.addf %14, %16 : vector<64x128xf32>
      %c0_9 = arith.constant 0 : index
      %c0_10 = arith.constant 0 : index
      %18 = vector.load %arg14[%c0_9, %c0_10] : memref<64x128xf32, #tpu.memory_space<vmem>>, vector<64x128xf32>
      tpu.vector_store %arg14[%c0_9, %c0_10], %17 {strides = array<i32>} : memref<64x128xf32, #tpu.memory_space<vmem>>, vector<64x128xf32>,
      %c0_11 = arith.constant 0 : index
      %c0_12 = arith.constant 0 : index
      %19 = vector.load %arg3[%c0_11, %c0_12] : memref<8x1xi32, #tpu.memory_space<vmem>>, vector<8x1xi32>
      %c1_i32 = arith.constant 1 : i32
      %20 = vector.broadcast %c1_i32 : i32 to vector<8x1xi32>
      %21 = arith.subi %19, %20 : vector<8x1xi32>
      %c0_13 = arith.constant 0 : index
      %c0_14 = arith.constant 0 : index
      %22 = vector.load %arg15[%c0_13, %c0_14] : memref<8x128xf32, #tpu.memory_space<vmem>>, vector<8x128xf32>
      %c0_15 = arith.constant 0 : index
      %c0_16 = arith.constant 0 : index
      %23 = vector.load %arg16[%c0_15, %c0_16] : memref<8x128xf32, #tpu.memory_space<vmem>>, vector<8x128xf32>
      %c0_17 = arith.constant 0 : index
      %c0_18 = arith.constant 0 : index
      %24 = vector.load %arg17[%c0_17, %c0_18] : memref<8x128xf32, #tpu.memory_space<vmem>>, vector<8x128xf32>
      %c0_i32_19 = arith.constant 0 : i32
      %c8_i32_20 = arith.constant 8 : i32
      %25 = arith.muli %c0_i32_19, %c8_i32_20 : i32
      %26 = tpu.assume_multiple %25, 8 : i32
      %27 = arith.index_cast %26 : i32 to index
      %c0_21 = arith.constant 0 : index
      %28 = vector.load %arg14[%27, %c0_21] : memref<64x128xf32, #tpu.memory_space<vmem>>, vector<8x128xf32>
      %c0_22 = arith.constant 0 : index
      %c0_23 = arith.constant 0 : index
      %29 = vector.load %arg9[%c0_22, %c0_23] : memref<128x128xf32, #tpu.memory_space<vmem>>, vector<128x128xf32>
      %cst_24 = arith.constant dense<0.000000e+00> : vector<8x128xf32>
      %30 = tpu.matmul %23, %29, %cst_24 {dimension_numbers = #tpu.dot_dimension_numbers<[1], [0], [0], [1], [0, 0, 1, 1], [], []>} : vector<8x128xf32>, vector<128x128xf32>, vector<8x128xf32> -> vector<8x128xf32>
      %c0_25 = arith.constant 0 : index
      %c0_26 = arith.constant 0 : index
      %31 = vector.load %arg7[%c0_25, %c0_26] : memref<128x128xf32, #tpu.memory_space<vmem>>, vector<128x128xf32>
      %cst_27 = arith.constant dense<0.000000e+00> : vector<8x128xf32>
      %32 = tpu.matmul %22, %31, %cst_27 {dimension_numbers = #tpu.dot_dimension_numbers<[1], [0], [0], [1], [0, 0, 1, 1], [], []>} : vector<8x128xf32>, vector<128x128xf32>, vector<8x128xf32> -> vector<8x128xf32>
      %33 = arith.addf %28, %32 : vector<8x128xf32>
      %34 = math.tanh %33 : vector<8x128xf32>
      %c0_28 = arith.constant 0 : index
      %c0_29 = arith.constant 0 : index
      %35 = vector.load %arg8[%c0_28, %c0_29] : memref<128x128xf32, #tpu.memory_space<vmem>>, vector<128x128xf32>
      %cst_30 = arith.constant dense<0.000000e+00> : vector<8x128xf32>
      %36 = tpu.matmul %34, %35, %cst_30 {dimension_numbers = #tpu.dot_dimension_numbers<[1], [0], [0], [1], [0, 0, 1, 1], [], []>} : vector<8x128xf32>, vector<128x128xf32>, vector<8x128xf32> -> vector<8x128xf32>
      %37 = arith.addf %36, %30 : vector<8x128xf32>
      %c0_31 = arith.constant 0 : index
      %c0_32 = arith.constant 0 : index
      %38 = vector.load %arg10[%c0_31, %c0_32] : memref<1x128xf32, #tpu.memory_space<vmem>>, vector<1x128xf32>
      %39 = vector.broadcast %38 : vector<1x128xf32> to vector<8x128xf32>
      %40 = arith.addf %37, %39 : vector<8x128xf32>
      %41 = math.tanh %40 : vector<8x128xf32>
      %42 = arith.addi %0, %c0_i32_19 : i32
      %43 = vector.broadcast %42 : i32 to vector<8x1xi32>
      %44 = arith.cmpi eq, %21, %43 : vector<8x1xi32>
      %45 = vector.shape_cast %44 : vector<8x1xi1> to vector<8x1xi1>
      %46 = vector.broadcast %45 : vector<8x1xi1> to vector<8x128xi1>
      %47 = arith.select %46, %41, %24 : vector<8x128xi1>, vector<8x128xf32>
      %c1_i32_33 = arith.constant 1 : i32
      %c8_i32_34 = arith.constant 8 : i32
      %48 = arith.muli %c1_i32_33, %c8_i32_34 : i32
      %49 = tpu.assume_multiple %48, 8 : i32
      %50 = arith.index_cast %49 : i32 to index
      %c0_35 = arith.constant 0 : index
      %51 = vector.load %arg14[%50, %c0_35] : memref<64x128xf32, #tpu.memory_space<vmem>>, vector<8x128xf32>
      %c0_36 = arith.constant 0 : index
      %c0_37 = arith.constant 0 : index
      %52 = vector.load %arg9[%c0_36, %c0_37] : memref<128x128xf32, #tpu.memory_space<vmem>>, vector<128x128xf32>
      %cst_38 = arith.constant dense<0.000000e+00> : vector<8x128xf32>
      %53 = tpu.matmul %41, %52, %cst_38 {dimension_numbers = #tpu.dot_dimension_numbers<[1], [0], [0], [1], [0, 0, 1, 1], [], []>} : vector<8x128xf32>, vector<128x128xf32>, vector<8x128xf32> -> vector<8x128xf32>
      %c0_39 = arith.constant 0 : index
      %c0_40 = arith.constant 0 : index
      %54 = vector.load %arg7[%c0_39, %c0_40] : memref<128x128xf32, #tpu.memory_space<vmem>>, vector<128x128xf32>
      %cst_41 = arith.constant dense<0.000000e+00> : vector<8x128xf32>
      %55 = tpu.matmul %34, %54, %cst_41 {dimension_numbers = #tpu.dot_dimension_numbers<[1], [0], [0], [1], [0, 0, 1, 1], [], []>} : vector<8x128xf32>, vector<128x128xf32>, vector<8x128xf32> -> vector<8x128xf32>
      %56 = arith.addf %51, %55 : vector<8x128xf32>
      %57 = math.tanh %56 : vector<8x128xf32>
      %c0_42 = arith.constant 0 : index
      %c0_43 = arith.constant 0 : index
      %58 = vector.load %arg8[%c0_42, %c0_43] : memref<128x128xf32, #tpu.memory_space<vmem>>, vector<128x128xf32>
      %cst_44 = arith.constant dense<0.000000e+00> : vector<8x128xf32>
      %59 = tpu.matmul %57, %58, %cst_44 {dimension_numbers = #tpu.dot_dimension_numbers<[1], [0], [0], [1], [0, 0, 1, 1], [], []>} : vector<8x128xf32>, vector<128x128xf32>, vector<8x128xf32> -> vector<8x128xf32>
      %60 = arith.addf %59, %53 : vector<8x128xf32>
      %c0_45 = arith.constant 0 : index
      %c0_46 = arith.constant 0 : index
      %61 = vector.load %arg10[%c0_45, %c0_46] : memref<1x128xf32, #tpu.memory_space<vmem>>, vector<1x128xf32>
      %62 = vector.broadcast %61 : vector<1x128xf32> to vector<8x128xf32>
      %63 = arith.addf %60, %62 : vector<8x128xf32>
      %64 = math.tanh %63 : vector<8x128xf32>
      %65 = arith.addi %0, %c1_i32_33 : i32
      %66 = vector.broadcast %65 : i32 to vector<8x1xi32>
      %67 = arith.cmpi eq, %21, %66 : vector<8x1xi32>
      %68 = vector.shape_cast %67 : vector<8x1xi1> to vector<8x1xi1>
      %69 = vector.broadcast %68 : vector<8x1xi1> to vector<8x128xi1>
      %70 = arith.select %69, %64, %47 : vector<8x128xi1>, vector<8x128xf32>
      %c2_i32 = arith.constant 2 : i32
      %c8_i32_47 = arith.constant 8 : i32
      %71 = arith.muli %c2_i32, %c8_i32_47 : i32
      %72 = tpu.assume_multiple %71, 8 : i32
      %73 = arith.index_cast %72 : i32 to index
      %c0_48 = arith.constant 0 : index
      %74 = vector.load %arg14[%73, %c0_48] : memref<64x128xf32, #tpu.memory_space<vmem>>, vector<8x128xf32>
      %c0_49 = arith.constant 0 : index
      %c0_50 = arith.constant 0 : index
      %75 = vector.load %arg9[%c0_49, %c0_50] : memref<128x128xf32, #tpu.memory_space<vmem>>, vector<128x128xf32>
      %cst_51 = arith.constant dense<0.000000e+00> : vector<8x128xf32>
      %76 = tpu.matmul %64, %75, %cst_51 {dimension_numbers = #tpu.dot_dimension_numbers<[1], [0], [0], [1], [0, 0, 1, 1], [], []>} : vector<8x128xf32>, vector<128x128xf32>, vector<8x128xf32> -> vector<8x128xf32>
      %c0_52 = arith.constant 0 : index
      %c0_53 = arith.constant 0 : index
      %77 = vector.load %arg7[%c0_52, %c0_53] : memref<128x128xf32, #tpu.memory_space<vmem>>, vector<128x128xf32>
      %cst_54 = arith.constant dense<0.000000e+00> : vector<8x128xf32>
      %78 = tpu.matmul %57, %77, %cst_54 {dimension_numbers = #tpu.dot_dimension_numbers<[1], [0], [0], [1], [0, 0, 1, 1], [], []>} : vector<8x128xf32>, vector<128x128xf32>, vector<8x128xf32> -> vector<8x128xf32>
      %79 = arith.addf %74, %78 : vector<8x128xf32>
      %80 = math.tanh %79 : vector<8x128xf32>
      %c0_55 = arith.constant 0 : index
      %c0_56 = arith.constant 0 : index
      %81 = vector.load %arg8[%c0_55, %c0_56] : memref<128x128xf32, #tpu.memory_space<vmem>>, vector<128x128xf32>
      %cst_57 = arith.constant dense<0.000000e+00> : vector<8x128xf32>
      %82 = tpu.matmul %80, %81, %cst_57 {dimension_numbers = #tpu.dot_dimension_numbers<[1], [0], [0], [1], [0, 0, 1, 1], [], []>} : vector<8x128xf32>, vector<128x128xf32>, vector<8x128xf32> -> vector<8x128xf32>
      %83 = arith.addf %82, %76 : vector<8x128xf32>
      %c0_58 = arith.constant 0 : index
      %c0_59 = arith.constant 0 : index
      %84 = vector.load %arg10[%c0_58, %c0_59] : memref<1x128xf32, #tpu.memory_space<vmem>>, vector<1x128xf32>
      %85 = vector.broadcast %84 : vector<1x128xf32> to vector<8x128xf32>
      %86 = arith.addf %83, %85 : vector<8x128xf32>
      %87 = math.tanh %86 : vector<8x128xf32>
      %88 = arith.addi %0, %c2_i32 : i32
      %89 = vector.broadcast %88 : i32 to vector<8x1xi32>
      %90 = arith.cmpi eq, %21, %89 : vector<8x1xi32>
      %91 = vector.shape_cast %90 : vector<8x1xi1> to vector<8x1xi1>
      %92 = vector.broadcast %91 : vector<8x1xi1> to vector<8x128xi1>
      %93 = arith.select %92, %87, %70 : vector<8x128xi1>, vector<8x128xf32>
      %c3_i32 = arith.constant 3 : i32
      %c8_i32_60 = arith.constant 8 : i32
      %94 = arith.muli %c3_i32, %c8_i32_60 : i32
      %95 = tpu.assume_multiple %94, 8 : i32
      %96 = arith.index_cast %95 : i32 to index
      %c0_61 = arith.constant 0 : index
      %97 = vector.load %arg14[%96, %c0_61] : memref<64x128xf32, #tpu.memory_space<vmem>>, vector<8x128xf32>
      %c0_62 = arith.constant 0 : index
      %c0_63 = arith.constant 0 : index
      %98 = vector.load %arg9[%c0_62, %c0_63] : memref<128x128xf32, #tpu.memory_space<vmem>>, vector<128x128xf32>
      %cst_64 = arith.constant dense<0.000000e+00> : vector<8x128xf32>
      %99 = tpu.matmul %87, %98, %cst_64 {dimension_numbers = #tpu.dot_dimension_numbers<[1], [0], [0], [1], [0, 0, 1, 1], [], []>} : vector<8x128xf32>, vector<128x128xf32>, vector<8x128xf32> -> vector<8x128xf32>
      %c0_65 = arith.constant 0 : index
      %c0_66 = arith.constant 0 : index
      %100 = vector.load %arg7[%c0_65, %c0_66] : memref<128x128xf32, #tpu.memory_space<vmem>>, vector<128x128xf32>
      %cst_67 = arith.constant dense<0.000000e+00> : vector<8x128xf32>
      %101 = tpu.matmul %80, %100, %cst_67 {dimension_numbers = #tpu.dot_dimension_numbers<[1], [0], [0], [1], [0, 0, 1, 1], [], []>} : vector<8x128xf32>, vector<128x128xf32>, vector<8x128xf32> -> vector<8x128xf32>
      %102 = arith.addf %97, %101 : vector<8x128xf32>
      %103 = math.tanh %102 : vector<8x128xf32>
      %c0_68 = arith.constant 0 : index
      %c0_69 = arith.constant 0 : index
      %104 = vector.load %arg8[%c0_68, %c0_69] : memref<128x128xf32, #tpu.memory_space<vmem>>, vector<128x128xf32>
      %cst_70 = arith.constant dense<0.000000e+00> : vector<8x128xf32>
      %105 = tpu.matmul %103, %104, %cst_70 {dimension_numbers = #tpu.dot_dimension_numbers<[1], [0], [0], [1], [0, 0, 1, 1], [], []>} : vector<8x128xf32>, vector<128x128xf32>, vector<8x128xf32> -> vector<8x128xf32>
      %106 = arith.addf %105, %99 : vector<8x128xf32>
      %c0_71 = arith.constant 0 : index
      %c0_72 = arith.constant 0 : index
      %107 = vector.load %arg10[%c0_71, %c0_72] : memref<1x128xf32, #tpu.memory_space<vmem>>, vector<1x128xf32>
      %108 = vector.broadcast %107 : vector<1x128xf32> to vector<8x128xf32>
      %109 = arith.addf %106, %108 : vector<8x128xf32>
      %110 = math.tanh %109 : vector<8x128xf32>
      %111 = arith.addi %0, %c3_i32 : i32
      %112 = vector.broadcast %111 : i32 to vector<8x1xi32>
      %113 = arith.cmpi eq, %21, %112 : vector<8x1xi32>
      %114 = vector.shape_cast %113 : vector<8x1xi1> to vector<8x1xi1>
      %115 = vector.broadcast %114 : vector<8x1xi1> to vector<8x128xi1>
      %116 = arith.select %115, %110, %93 : vector<8x128xi1>, vector<8x128xf32>
      %c4_i32 = arith.constant 4 : i32
      %c8_i32_73 = arith.constant 8 : i32
      %117 = arith.muli %c4_i32, %c8_i32_73 : i32
      %118 = tpu.assume_multiple %117, 8 : i32
      %119 = arith.index_cast %118 : i32 to index
      %c0_74 = arith.constant 0 : index
      %120 = vector.load %arg14[%119, %c0_74] : memref<64x128xf32, #tpu.memory_space<vmem>>, vector<8x128xf32>
      %c0_75 = arith.constant 0 : index
      %c0_76 = arith.constant 0 : index
      %121 = vector.load %arg9[%c0_75, %c0_76] : memref<128x128xf32, #tpu.memory_space<vmem>>, vector<128x128xf32>
      %cst_77 = arith.constant dense<0.000000e+00> : vector<8x128xf32>
      %122 = tpu.matmul %110, %121, %cst_77 {dimension_numbers = #tpu.dot_dimension_numbers<[1], [0], [0], [1], [0, 0, 1, 1], [], []>} : vector<8x128xf32>, vector<128x128xf32>, vector<8x128xf32> -> vector<8x128xf32>
      %c0_78 = arith.constant 0 : index
      %c0_79 = arith.constant 0 : index
      %123 = vector.load %arg7[%c0_78, %c0_79] : memref<128x128xf32, #tpu.memory_space<vmem>>, vector<128x128xf32>
      %cst_80 = arith.constant dense<0.000000e+00> : vector<8x128xf32>
      %124 = tpu.matmul %103, %123, %cst_80 {dimension_numbers = #tpu.dot_dimension_numbers<[1], [0], [0], [1], [0, 0, 1, 1], [], []>} : vector<8x128xf32>, vector<128x128xf32>, vector<8x128xf32> -> vector<8x128xf32>
      %125 = arith.addf %120, %124 : vector<8x128xf32>
      %126 = math.tanh %125 : vector<8x128xf32>
      %c0_81 = arith.constant 0 : index
      %c0_82 = arith.constant 0 : index
      %127 = vector.load %arg8[%c0_81, %c0_82] : memref<128x128xf32, #tpu.memory_space<vmem>>, vector<128x128xf32>
      %cst_83 = arith.constant dense<0.000000e+00> : vector<8x128xf32>
      %128 = tpu.matmul %126, %127, %cst_83 {dimension_numbers = #tpu.dot_dimension_numbers<[1], [0], [0], [1], [0, 0, 1, 1], [], []>} : vector<8x128xf32>, vector<128x128xf32>, vector<8x128xf32> -> vector<8x128xf32>
      %129 = arith.addf %128, %122 : vector<8x128xf32>
      %c0_84 = arith.constant 0 : index
      %c0_85 = arith.constant 0 : index
      %130 = vector.load %arg10[%c0_84, %c0_85] : memref<1x128xf32, #tpu.memory_space<vmem>>, vector<1x128xf32>
      %131 = vector.broadcast %130 : vector<1x128xf32> to vector<8x128xf32>
      %132 = arith.addf %129, %131 : vector<8x128xf32>
      %133 = math.tanh %132 : vector<8x128xf32>
      %134 = arith.addi %0, %c4_i32 : i32
      %135 = vector.broadcast %134 : i32 to vector<8x1xi32>
      %136 = arith.cmpi eq, %21, %135 : vector<8x1xi32>
      %137 = vector.shape_cast %136 : vector<8x1xi1> to vector<8x1xi1>
      %138 = vector.broadcast %137 : vector<8x1xi1> to vector<8x128xi1>
      %139 = arith.select %138, %133, %116 : vector<8x128xi1>, vector<8x128xf32>
      %c5_i32 = arith.constant 5 : i32
      %c8_i32_86 = arith.constant 8 : i32
      %140 = arith.muli %c5_i32, %c8_i32_86 : i32
      %141 = tpu.assume_multiple %140, 8 : i32
      %142 = arith.index_cast %141 : i32 to index
      %c0_87 = arith.constant 0 : index
      %143 = vector.load %arg14[%142, %c0_87] : memref<64x128xf32, #tpu.memory_space<vmem>>, vector<8x128xf32>
      %c0_88 = arith.constant 0 : index
      %c0_89 = arith.constant 0 : index
      %144 = vector.load %arg9[%c0_88, %c0_89] : memref<128x128xf32, #tpu.memory_space<vmem>>, vector<128x128xf32>
      %cst_90 = arith.constant dense<0.000000e+00> : vector<8x128xf32>
      %145 = tpu.matmul %133, %144, %cst_90 {dimension_numbers = #tpu.dot_dimension_numbers<[1], [0], [0], [1], [0, 0, 1, 1], [], []>} : vector<8x128xf32>, vector<128x128xf32>, vector<8x128xf32> -> vector<8x128xf32>
      %c0_91 = arith.constant 0 : index
      %c0_92 = arith.constant 0 : index
      %146 = vector.load %arg7[%c0_91, %c0_92] : memref<128x128xf32, #tpu.memory_space<vmem>>, vector<128x128xf32>
      %cst_93 = arith.constant dense<0.000000e+00> : vector<8x128xf32>
      %147 = tpu.matmul %126, %146, %cst_93 {dimension_numbers = #tpu.dot_dimension_numbers<[1], [0], [0], [1], [0, 0, 1, 1], [], []>} : vector<8x128xf32>, vector<128x128xf32>, vector<8x128xf32> -> vector<8x128xf32>
      %148 = arith.addf %143, %147 : vector<8x128xf32>
      %149 = math.tanh %148 : vector<8x128xf32>
      %c0_94 = arith.constant 0 : index
      %c0_95 = arith.constant 0 : index
      %150 = vector.load %arg8[%c0_94, %c0_95] : memref<128x128xf32, #tpu.memory_space<vmem>>, vector<128x128xf32>
      %cst_96 = arith.constant dense<0.000000e+00> : vector<8x128xf32>
      %151 = tpu.matmul %149, %150, %cst_96 {dimension_numbers = #tpu.dot_dimension_numbers<[1], [0], [0], [1], [0, 0, 1, 1], [], []>} : vector<8x128xf32>, vector<128x128xf32>, vector<8x128xf32> -> vector<8x128xf32>
      %152 = arith.addf %151, %145 : vector<8x128xf32>
      %c0_97 = arith.constant 0 : index
      %c0_98 = arith.constant 0 : index
      %153 = vector.load %arg10[%c0_97, %c0_98] : memref<1x128xf32, #tpu.memory_space<vmem>>, vector<1x128xf32>
      %154 = vector.broadcast %153 : vector<1x128xf32> to vector<8x128xf32>
      %155 = arith.addf %152, %154 : vector<8x128xf32>
      %156 = math.tanh %155 : vector<8x128xf32>
      %157 = arith.addi %0, %c5_i32 : i32
      %158 = vector.broadcast %157 : i32 to vector<8x1xi32>
      %159 = arith.cmpi eq, %21, %158 : vector<8x1xi32>
      %160 = vector.shape_cast %159 : vector<8x1xi1> to vector<8x1xi1>
      %161 = vector.broadcast %160 : vector<8x1xi1> to vector<8x128xi1>
      %162 = arith.select %161, %156, %139 : vector<8x128xi1>, vector<8x128xf32>
      %c6_i32 = arith.constant 6 : i32
      %c8_i32_99 = arith.constant 8 : i32
      %163 = arith.muli %c6_i32, %c8_i32_99 : i32
      %164 = tpu.assume_multiple %163, 8 : i32
      %165 = arith.index_cast %164 : i32 to index
      %c0_100 = arith.constant 0 : index
      %166 = vector.load %arg14[%165, %c0_100] : memref<64x128xf32, #tpu.memory_space<vmem>>, vector<8x128xf32>
      %c0_101 = arith.constant 0 : index
      %c0_102 = arith.constant 0 : index
      %167 = vector.load %arg9[%c0_101, %c0_102] : memref<128x128xf32, #tpu.memory_space<vmem>>, vector<128x128xf32>
      %cst_103 = arith.constant dense<0.000000e+00> : vector<8x128xf32>
      %168 = tpu.matmul %156, %167, %cst_103 {dimension_numbers = #tpu.dot_dimension_numbers<[1], [0], [0], [1], [0, 0, 1, 1], [], []>} : vector<8x128xf32>, vector<128x128xf32>, vector<8x128xf32> -> vector<8x128xf32>
      %c0_104 = arith.constant 0 : index
      %c0_105 = arith.constant 0 : index
      %169 = vector.load %arg7[%c0_104, %c0_105] : memref<128x128xf32, #tpu.memory_space<vmem>>, vector<128x128xf32>
      %cst_106 = arith.constant dense<0.000000e+00> : vector<8x128xf32>
      %170 = tpu.matmul %149, %169, %cst_106 {dimension_numbers = #tpu.dot_dimension_numbers<[1], [0], [0], [1], [0, 0, 1, 1], [], []>} : vector<8x128xf32>, vector<128x128xf32>, vector<8x128xf32> -> vector<8x128xf32>
      %171 = arith.addf %166, %170 : vector<8x128xf32>
      %172 = math.tanh %171 : vector<8x128xf32>
      %c0_107 = arith.constant 0 : index
      %c0_108 = arith.constant 0 : index
      %173 = vector.load %arg8[%c0_107, %c0_108] : memref<128x128xf32, #tpu.memory_space<vmem>>, vector<128x128xf32>
      %cst_109 = arith.constant dense<0.000000e+00> : vector<8x128xf32>
      %174 = tpu.matmul %172, %173, %cst_109 {dimension_numbers = #tpu.dot_dimension_numbers<[1], [0], [0], [1], [0, 0, 1, 1], [], []>} : vector<8x128xf32>, vector<128x128xf32>, vector<8x128xf32> -> vector<8x128xf32>
      %175 = arith.addf %174, %168 : vector<8x128xf32>
      %c0_110 = arith.constant 0 : index
      %c0_111 = arith.constant 0 : index
      %176 = vector.load %arg10[%c0_110, %c0_111] : memref<1x128xf32, #tpu.memory_space<vmem>>, vector<1x128xf32>
      %177 = vector.broadcast %176 : vector<1x128xf32> to vector<8x128xf32>
      %178 = arith.addf %175, %177 : vector<8x128xf32>
      %179 = math.tanh %178 : vector<8x128xf32>
      %180 = arith.addi %0, %c6_i32 : i32
      %181 = vector.broadcast %180 : i32 to vector<8x1xi32>
      %182 = arith.cmpi eq, %21, %181 : vector<8x1xi32>
      %183 = vector.shape_cast %182 : vector<8x1xi1> to vector<8x1xi1>
      %184 = vector.broadcast %183 : vector<8x1xi1> to vector<8x128xi1>
      %185 = arith.select %184, %179, %162 : vector<8x128xi1>, vector<8x128xf32>
      %c7_i32 = arith.constant 7 : i32
      %c8_i32_112 = arith.constant 8 : i32
      %186 = arith.muli %c7_i32, %c8_i32_112 : i32
      %187 = tpu.assume_multiple %186, 8 : i32
      %188 = arith.index_cast %187 : i32 to index
      %c0_113 = arith.constant 0 : index
      %189 = vector.load %arg14[%188, %c0_113] : memref<64x128xf32, #tpu.memory_space<vmem>>, vector<8x128xf32>
      %c0_114 = arith.constant 0 : index
      %c0_115 = arith.constant 0 : index
      %190 = vector.load %arg9[%c0_114, %c0_115] : memref<128x128xf32, #tpu.memory_space<vmem>>, vector<128x128xf32>
      %cst_116 = arith.constant dense<0.000000e+00> : vector<8x128xf32>
      %191 = tpu.matmul %179, %190, %cst_116 {dimension_numbers = #tpu.dot_dimension_numbers<[1], [0], [0], [1], [0, 0, 1, 1], [], []>} : vector<8x128xf32>, vector<128x128xf32>, vector<8x128xf32> -> vector<8x128xf32>
      %c0_117 = arith.constant 0 : index
      %c0_118 = arith.constant 0 : index
      %192 = vector.load %arg7[%c0_117, %c0_118] : memref<128x128xf32, #tpu.memory_space<vmem>>, vector<128x128xf32>
      %cst_119 = arith.constant dense<0.000000e+00> : vector<8x128xf32>
      %193 = tpu.matmul %172, %192, %cst_119 {dimension_numbers = #tpu.dot_dimension_numbers<[1], [0], [0], [1], [0, 0, 1, 1], [], []>} : vector<8x128xf32>, vector<128x128xf32>, vector<8x128xf32> -> vector<8x128xf32>
      %194 = arith.addf %189, %193 : vector<8x128xf32>
      %195 = math.tanh %194 : vector<8x128xf32>
      %c0_120 = arith.constant 0 : index
      %c0_121 = arith.constant 0 : index
      %196 = vector.load %arg8[%c0_120, %c0_121] : memref<128x128xf32, #tpu.memory_space<vmem>>, vector<128x128xf32>
      %cst_122 = arith.constant dense<0.000000e+00> : vector<8x128xf32>
      %197 = tpu.matmul %195, %196, %cst_122 {dimension_numbers = #tpu.dot_dimension_numbers<[1], [0], [0], [1], [0, 0, 1, 1], [], []>} : vector<8x128xf32>, vector<128x128xf32>, vector<8x128xf32> -> vector<8x128xf32>
      %198 = arith.addf %197, %191 : vector<8x128xf32>
      %c0_123 = arith.constant 0 : index
      %c0_124 = arith.constant 0 : index
      %199 = vector.load %arg10[%c0_123, %c0_124] : memref<1x128xf32, #tpu.memory_space<vmem>>, vector<1x128xf32>
      %200 = vector.broadcast %199 : vector<1x128xf32> to vector<8x128xf32>
      %201 = arith.addf %198, %200 : vector<8x128xf32>
      %202 = math.tanh %201 : vector<8x128xf32>
      %203 = arith.addi %0, %c7_i32 : i32
      %204 = vector.broadcast %203 : i32 to vector<8x1xi32>
      %205 = arith.cmpi eq, %21, %204 : vector<8x1xi32>
      %206 = vector.shape_cast %205 : vector<8x1xi1> to vector<8x1xi1>
      %207 = vector.broadcast %206 : vector<8x1xi1> to vector<8x128xi1>
      %208 = arith.select %207, %202, %185 : vector<8x128xi1>, vector<8x128xf32>
      %c8_i32_125 = arith.constant 8 : i32
      %c0_126 = arith.constant 0 : index
      %c0_127 = arith.constant 0 : index
      %209 = vector.load %arg15[%c0_126, %c0_127] : memref<8x128xf32, #tpu.memory_space<vmem>>, vector<8x128xf32>
      tpu.vector_store %arg15[%c0_126, %c0_127], %195 {strides = array<i32>} : memref<8x128xf32, #tpu.memory_space<vmem>>, vector<8x128xf32>,
      %c0_128 = arith.constant 0 : index
      %c0_129 = arith.constant 0 : index
      %210 = vector.load %arg16[%c0_128, %c0_129] : memref<8x128xf32, #tpu.memory_space<vmem>>, vector<8x128xf32>
      tpu.vector_store %arg16[%c0_128, %c0_129], %202 {strides = array<i32>} : memref<8x128xf32, #tpu.memory_space<vmem>>, vector<8x128xf32>,
      %c0_130 = arith.constant 0 : index
      %c0_131 = arith.constant 0 : index
      %211 = vector.load %arg17[%c0_130, %c0_131] : memref<8x128xf32, #tpu.memory_space<vmem>>, vector<8x128xf32>
      tpu.vector_store %arg17[%c0_130, %c0_131], %208 {strides = array<i32>} : memref<8x128xf32, #tpu.memory_space<vmem>>, vector<8x128xf32>,
    } else {
    }
    %c0_i32_2 = arith.constant 0 : i32
    %9 = arith.cmpi eq, %arg1, %c0_i32_2 : i32
    %10 = arith.extui %9 : i1 to i32
    %c0_i32_3 = arith.constant 0 : i32
    %11 = arith.cmpi ne, %10, %c0_i32_3 : i32
    scf.if %11 {
      %c0 = arith.constant 0 : index
      %c0_4 = arith.constant 0 : index
      %12 = vector.load %arg17[%c0, %c0_4] : memref<8x128xf32, #tpu.memory_space<vmem>>, vector<8x128xf32>
      %c0_5 = arith.constant 0 : index
      %c0_6 = arith.constant 0 : index
      %13 = vector.load %arg11[%c0_5, %c0_6] : memref<128x128xf32, #tpu.memory_space<vmem>>, vector<128x128xf32>
      %cst = arith.constant dense<0.000000e+00> : vector<8x128xf32>
      %14 = tpu.matmul %12, %13, %cst {dimension_numbers = #tpu.dot_dimension_numbers<[1], [0], [0], [1], [0, 0, 1, 1], [], []>} : vector<8x128xf32>, vector<128x128xf32>, vector<8x128xf32> -> vector<8x128xf32>
      %c0_7 = arith.constant 0 : index
      %c0_8 = arith.constant 0 : index
      %15 = vector.load %arg12[%c0_7, %c0_8] : memref<1x128xf32, #tpu.memory_space<vmem>>, vector<1x128xf32>
      %16 = vector.broadcast %15 : vector<1x128xf32> to vector<8x128xf32>
      %17 = arith.addf %14, %16 : vector<8x128xf32>
      %cst_9 = arith.constant dense<0xFF800000> : vector<8xf32>
      %18 = vector.multi_reduction <maximumf>, %17, %cst_9 [1] : vector<8x128xf32> to vector<8xf32>
      %19 = vector.shape_cast %18 : vector<8xf32> to vector<8x1xf32>
      %20 = vector.broadcast %19 : vector<8x1xf32> to vector<8x128xf32>
      %21 = arith.subf %17, %20 : vector<8x128xf32>
      %22 = math.exp %21 : vector<8x128xf32>
      %cst_10 = arith.constant dense<0.000000e+00> : vector<8xf32>
      %23 = vector.multi_reduction <add>, %22, %cst_10 [1] : vector<8x128xf32> to vector<8xf32>
      %24 = vector.shape_cast %23 : vector<8xf32> to vector<8x1xf32>
      %25 = math.log %24 : vector<8x1xf32>
      %26 = vector.broadcast %25 : vector<8x1xf32> to vector<8x128xf32>
      %27 = arith.subf %21, %26 : vector<8x128xf32>
      %c0_11 = arith.constant 0 : index
      %c0_12 = arith.constant 0 : index
      %28 = vector.load %arg13[%c0_11, %c0_12] : memref<8x128xf32, #tpu.memory_space<vmem>>, vector<8x128xf32>
      tpu.vector_store %arg13[%c0_11, %c0_12], %27 {strides = array<i32>} : memref<8x128xf32, #tpu.memory_space<vmem>>, vector<8x128xf32>,
    } else {
    }
    return
  }
  func.func @transform_0(%arg0: i32, %arg1: i32, %arg2: memref<1xi32, #tpu.memory_space<smem>>) -> (i32, i32) {
    %c0_i32 = arith.constant 0 : i32
    %c0_i32_0 = arith.constant 0 : i32
    return %arg0, %c0_i32 : i32, i32
  }
  func.func @transform_1(%arg0: i32, %arg1: i32, %arg2: memref<1xi32, #tpu.memory_space<smem>>) -> (i32, i32) {
    %c1_i32 = arith.constant 1 : i32
    %0 = arith.muli %arg0, %c1_i32 : i32
    %1 = arith.addi %0, %arg1 : i32
    %c0_i32 = arith.constant 0 : i32
    %c0_i32_0 = arith.constant 0 : i32
    return %1, %c0_i32 : i32, i32
  }
  func.func @transform_2(%arg0: i32, %arg1: i32, %arg2: memref<1xi32, #tpu.memory_space<smem>>) -> (i32, i32) {
    %c0_i32 = arith.constant 0 : i32
    %c0_i32_0 = arith.constant 0 : i32
    %c0_i32_1 = arith.constant 0 : i32
    return %c0_i32, %c0_i32_0 : i32, i32
  }
  func.func @transform_3(%arg0: i32, %arg1: i32, %arg2: memref<1xi32, #tpu.memory_space<smem>>) -> (i32, i32) {
    %c0_i32 = arith.constant 0 : i32
    %c0_i32_0 = arith.constant 0 : i32
    %c0_i32_1 = arith.constant 0 : i32
    return %c0_i32, %c0_i32_0 : i32, i32
  }
  func.func @transform_4(%arg0: i32, %arg1: i32, %arg2: memref<1xi32, #tpu.memory_space<smem>>) -> (i32, i32) {
    %c0_i32 = arith.constant 0 : i32
    %c0_i32_0 = arith.constant 0 : i32
    %c0_i32_1 = arith.constant 0 : i32
    return %c0_i32, %c0_i32_0 : i32, i32
  }
  func.func @transform_5(%arg0: i32, %arg1: i32, %arg2: memref<1xi32, #tpu.memory_space<smem>>) -> (i32, i32) {
    %c0_i32 = arith.constant 0 : i32
    %c0_i32_0 = arith.constant 0 : i32
    %c0_i32_1 = arith.constant 0 : i32
    return %c0_i32, %c0_i32_0 : i32, i32
  }
  func.func @transform_6(%arg0: i32, %arg1: i32, %arg2: memref<1xi32, #tpu.memory_space<smem>>) -> (i32, i32) {
    %c0_i32 = arith.constant 0 : i32
    %c0_i32_0 = arith.constant 0 : i32
    %c0_i32_1 = arith.constant 0 : i32
    return %c0_i32, %c0_i32_0 : i32, i32
  }
  func.func @transform_7(%arg0: i32, %arg1: i32, %arg2: memref<1xi32, #tpu.memory_space<smem>>) -> (i32, i32) {
    %c0_i32 = arith.constant 0 : i32
    %c0_i32_0 = arith.constant 0 : i32
    %c0_i32_1 = arith.constant 0 : i32
    return %c0_i32, %c0_i32_0 : i32, i32
  }
  func.func @transform_8(%arg0: i32, %arg1: i32, %arg2: memref<1xi32, #tpu.memory_space<smem>>) -> (i32, i32) {
    %c0_i32 = arith.constant 0 : i32
    %c0_i32_0 = arith.constant 0 : i32
    %c0_i32_1 = arith.constant 0 : i32
    return %c0_i32, %c0_i32_0 : i32, i32
  }
  func.func @transform_9(%arg0: i32, %arg1: i32, %arg2: memref<1xi32, #tpu.memory_space<smem>>) -> (i32, i32) {
    %c0_i32 = arith.constant 0 : i32
    %c0_i32_0 = arith.constant 0 : i32
    %c0_i32_1 = arith.constant 0 : i32
    return %c0_i32, %c0_i32_0 : i32, i32
  }
  func.func @transform_10(%arg0: i32, %arg1: i32, %arg2: memref<1xi32, #tpu.memory_space<smem>>) -> (i32, i32) {
    %c0_i32 = arith.constant 0 : i32
    %c0_i32_0 = arith.constant 0 : i32
    return %arg0, %c0_i32 : i32, i32
  }
}

</mosaic_0001>

<bundles_post_ra>
// kernel: tpu_custom_call.1
= control target key start
LH: loop header
LB: loop body
LE: loop exit
PB: predicated region body
PF: predicated region fallthrough
CT: control target
= control target key end

     0   :  { %17 = vsyncpa [#allocation9], 0  ;;  %s5734_s0 = inlined_call_operand.<no memory space> [shape: s32[1], index: 0, kind: input, shape index: {}]   ;;  %s5735_s1 = inlined_call_operand.vmem [shape: s32[8,1], index: 1, kind: input, shape index: {}]   ;;  %s5736_s2 = inlined_call_operand.hbm [shape: f32[64,768], index: 2, kind: input, shape index: {}]   ;;  %s5737_s3 = inlined_call_operand.hbm [shape: f32[768,128], index: 3, kind: input, shape index: {}]   ;;  %s5738_s4 = inlined_call_operand.vmem [shape: f32[1,128], index: 4, kind: input, shape index: {}]   ;;  %s5739_s5 = inlined_call_operand.hbm [shape: f32[128,128], index: 5, kind: input, shape index: {}]   ;;  %s5740_s6 = inlined_call_operand.hbm [shape: f32[128,128], index: 6, kind: input, shape index: {}]   ;;  %s5741_s7 = inlined_call_operand.hbm [shape: f32[128,128], index: 7, kind: input, shape index: {}]   ;;  %s5742_s8 = inlined_call_operand.vmem [shape: f32[1,128], index: 8, kind: input, shape index: {}]   ;;  %s5743_s9 = inlined_call_operand.hbm [shape: f32[128,128], index: 9, kind: input, shape index: {}]   ;;  %s5744_s10 = inlined_call_operand.vmem [shape: f32[1,128], index: 10, kind: input, shape index: {}]   ;;  %s5745_s11 = inlined_call_operand.hbm [shape: f32[8,128], index: 11, kind: output, shape index: {}]  }
   0x1   :  { %18 = vsyncpa [#allocation12], 0 }
   0x2   :  { %19 = vsyncpa [#allocation15], 0 }
   0x3   :  { %20 = vsyncpa [#allocation18], 0 }
   0x4   :  { %21 = vsyncpa [#allocation10], 0  ;;  %s4991_s17 = smov [#allocation11]   ;;  %s4827_s21 = scalar_lea.hbm %s5737_s3, 12288 }
   0x5   :  { %s46_s18 = sshll.u32 %s4991_s17, 4  ;;  %p4828_p0 = scmp.ne.s32.totalorder %s5737_s3, %s4827_s21  ;;  %s47_s18 = int_to_ptr.vmem [resolvable:$true] %s46_s18 }
   0x6   :  { %p4831_p1 = scmp.lt.u32.totalorder %s4827_s21, %s5737_s3 }
   0x8   :  { %p4833_p2 = pnand %p4831_p1, %p4828_p0 }
   0xa   :  { %4836 = shalt.err (!%p4833_p2)
}
   0xb   :  { %s4837_s26 = scalar_lea.vmem %s47_s18, 12288  ;;  %p4842_p4 = scmp.lt.s32.totalorder %s47_s18, %s47_s18 }
   0xc   :  { %p4838_p3 = scmp.ne.s32.totalorder %s47_s18, %s4837_s26  ;;  %p4843_p5 = scmp.lt.s32.totalorder %s4837_s26, %s4837_s26 }
   0xe   :  { %p4844_p6 = por %p4843_p5, %p4842_p4 }
  0x10   :  { %p4845_p7 = pnand %p4844_p6, %p4838_p3 }
  0x12   :  { %4848 = shalt.err (!%p4845_p7)
}
  0x13   :  { %s4992_s27 = smov 128   ;;  %s4993_s28 = smov 8  }
  0x14   :  { %52 = dma.hbm_to_vmem [thread:$0]  %s5737_s3, 12288, %s47_s18, [#allocation12], %s4992_s27, %s4992_s27, %s4993_s28  }
  0x15   :  { %s4994_s12 = smov [#allocation14]   ;;  %s4995_s14 = smov [#allocation8]  }
  0x16   :  { %s72_s13 = sshll.u32 %s4994_s12, 4  ;;  %s34_s15 = sshll.u32 %s4995_s14, 4  ;;  %s73_s13 = int_to_ptr.vmem [resolvable:$true] %s72_s13  ;;  %s35_s15 = int_to_ptr.vmem [resolvable:$true] %s34_s15 }
  0x17   :  { %s4849_s19 = scalar_lea.hbm %s5740_s6, 2048 }
  0x18   :  { %p4850_p8 = scmp.ne.s32.totalorder %s5740_s6, %s4849_s19  ;;  %p4853_p9 = scmp.lt.u32.totalorder %s4849_s19, %s5740_s6 }
  0x1a   :  { %p4855_p10 = pnand %p4853_p9, %p4850_p8 }
  0x1c   :  { %4858 = shalt.err (!%p4855_p10)
}
  0x1d   :  { %s4859_s3 = scalar_lea.vmem %s73_s13, 2048  ;;  %p4864_p12 = scmp.lt.s32.totalorder %s73_s13, %s73_s13 }
  0x1e   :  { %p4860_p11 = scmp.ne.s32.totalorder %s73_s13, %s4859_s3  ;;  %p4865_p13 = scmp.lt.s32.totalorder %s4859_s3, %s4859_s3 }
  0x20   :  { %p4866_p0 = por %p4865_p13, %p4864_p12 }
  0x22   :  { %p4867_p1 = pnand %p4866_p0, %p4860_p11 }
  0x24   :  { %4870 = shalt.err (!%p4867_p1)
}
  0x25   :  { %78 = dma.hbm_to_vmem [thread:$0]  %s5740_s6, 2048, %s73_s13, [#allocation15], %s4992_s27, %s4992_s27, %s4993_s28  }
  0x26   :  { %s4871_s29 = scalar_lea.hbm %s5736_s2, 6144 }
  0x27   :  { %p4872_p2 = scmp.ne.s32.totalorder %s5736_s2, %s4871_s29  ;;  %p4875_p3 = scmp.lt.u32.totalorder %s4871_s29, %s5736_s2 }
  0x29   :  { %p4877_p4 = pnand %p4875_p3, %p4872_p2 }
  0x2b   :  { %4880 = shalt.err (!%p4877_p4)
}
  0x2c   :  { %s4881_s17 = scalar_lea.vmem %s35_s15, 6144  ;;  %p4886_p6 = scmp.lt.s32.totalorder %s35_s15, %s35_s15 }
  0x2d   :  { %p4882_p5 = scmp.ne.s32.totalorder %s35_s15, %s4881_s17  ;;  %p4887_p7 = scmp.lt.s32.totalorder %s4881_s17, %s4881_s17 }
  0x2f   :  { %p4888_p8 = por %p4887_p7, %p4886_p6 }
  0x31   :  { %p4889_p9 = pnand %p4888_p8, %p4882_p5 }
  0x33   :  { %4892 = shalt.err (!%p4889_p9)
}
  0x34   :  { %s4996_s6 = smov 768   ;;  %s4997_s13 = smov 48  }
  0x35   :  { %40 = dma.hbm_to_vmem [thread:$0]  %s5736_s2, 6144, %s35_s15, [#allocation9], %s4996_s6, %s4996_s6, %s4997_s13  }
  0x36   :  { %s4998_s21 = smov [#allocation13]   ;;  %s4999_s23 = smov [#allocation16]  }
  0x37   :  { %s60_s22 = sshll.u32 %s4998_s21, 4  ;;  %s84_s3 = sshll.u32 %s4999_s23, 4  ;;  %s61_s22 = int_to_ptr.vmem [resolvable:$true] %s60_s22  ;;  %s85_s3 = int_to_ptr.vmem [resolvable:$true] %s84_s3 }
  0x38   :  { %s4893_s25 = scalar_lea.hbm %s5739_s5, 2048 }
  0x39   :  { %p4894_p10 = scmp.ne.s32.totalorder %s5739_s5, %s4893_s25  ;;  %p4897_p11 = scmp.lt.u32.totalorder %s4893_s25, %s5739_s5 }
  0x3b   :  { %p4899_p12 = pnand %p4897_p11, %p4894_p10 }
  0x3d   :  { %4902 = shalt.err (!%p4899_p12)
}
  0x3e   :  { %s4903_s2 = scalar_lea.vmem %s61_s22, 2048  ;;  %p4908_p0 = scmp.lt.s32.totalorder %s61_s22, %s61_s22 }
  0x3f   :  { %p4904_p13 = scmp.ne.s32.totalorder %s61_s22, %s4903_s2  ;;  %p4909_p1 = scmp.lt.s32.totalorder %s4903_s2, %s4903_s2 }
  0x41   :  { %p4910_p2 = por %p4909_p1, %p4908_p0 }
  0x43   :  { %p4911_p3 = pnand %p4910_p2, %p4904_p13 }
  0x45   :  { %4914 = shalt.err (!%p4911_p3)
}
  0x46   :  { %66 = dma.hbm_to_vmem [thread:$0]  %s5739_s5, 2048, %s61_s22, [#allocation12], %s4992_s27, %s4992_s27, %s4993_s28  }
  0x47   :  { %s4915_s6 = scalar_lea.hbm %s5741_s7, 2048 }
  0x48   :  { %p4916_p4 = scmp.ne.s32.totalorder %s5741_s7, %s4915_s6  ;;  %p4919_p5 = scmp.lt.u32.totalorder %s4915_s6, %s5741_s7 }
  0x4a   :  { %p4921_p6 = pnand %p4919_p5, %p4916_p4 }
  0x4c   :  { %4924 = shalt.err (!%p4921_p6)
}
  0x4d   :  { %s4925_s23 = scalar_lea.vmem %s85_s3, 2048  ;;  %p4930_p8 = scmp.lt.s32.totalorder %s85_s3, %s85_s3 }
  0x4e   :  { %p4926_p7 = scmp.ne.s32.totalorder %s85_s3, %s4925_s23  ;;  %p4931_p9 = scmp.lt.s32.totalorder %s4925_s23, %s4925_s23 }
  0x50   :  { %p4932_p10 = por %p4931_p9, %p4930_p8 }
  0x52   :  { %p4933_p11 = pnand %p4932_p10, %p4926_p7 }
  0x54   :  { %4936 = shalt.err (!%p4933_p11)
}
  0x55   :  { %90 = dma.hbm_to_vmem [thread:$0]  %s5741_s7, 2048, %s85_s3, [#allocation15], %s4992_s27, %s4992_s27, %s4993_s28  }
  0x56   :  { %s5000_s18 = smov [#allocation17]   ;;  %s4937_s29 = scalar_lea.hbm %s5743_s9, 2048 }
  0x57   :  { %s98_s24 = sshll.u32 %s5000_s18, 4  ;;  %p4938_p12 = scmp.ne.s32.totalorder %s5743_s9, %s4937_s29  ;;  %s99_s24 = int_to_ptr.vmem [resolvable:$true] %s98_s24 }
  0x58   :  { %p4941_p13 = scmp.lt.u32.totalorder %s4937_s29, %s5743_s9 }
  0x5a   :  { %p4943_p0 = pnand %p4941_p13, %p4938_p12 }
  0x5c   :  { %4946 = shalt.err (!%p4943_p0)
}
  0x5d   :  { %s4947_s14 = scalar_lea.vmem %s99_s24, 2048  ;;  %p4952_p2 = scmp.lt.s32.totalorder %s99_s24, %s99_s24 }
  0x5e   :  { %p4948_p1 = scmp.ne.s32.totalorder %s99_s24, %s4947_s14  ;;  %p4953_p3 = scmp.lt.s32.totalorder %s4947_s14, %s4947_s14 }
  0x60   :  { %p4954_p4 = por %p4953_p3, %p4952_p2 }
  0x62   :  { %p4955_p5 = pnand %p4954_p4, %p4948_p1 }
  0x64   :  { %4958 = shalt.err (!%p4955_p5)
}
  0x65   :  { %104 = dma.hbm_to_vmem [thread:$0]  %s5743_s9, 2048, %s99_s24, [#allocation18], %s4992_s27, %s4992_s27, %s4993_s28  }
  0x66   :  { %4981 = dma.done.wait [#allocation9], 6144  }
  0x67   :  { %4982 = vsyncadd [#allocation9], 4294961152 }
  0x68   :  { %4983 = dma.done.wait [#allocation12], 14336  }
  0x69   :  { %4984 = vsyncadd [#allocation12], 4294952960 }
  0x6a   :  { %4985 = dma.done.wait [#allocation15], 4096  }
  0x6b   :  { %4986 = vsyncadd [#allocation15], 4294963200 }
  0x6c   :  { %4987 = dma.done.wait [#allocation18], 2048  }
  0x6d   :  { %4988 = vsyncadd [#allocation18], 4294965248  ;;  %v5001_v0 = vmov 0.0   ;;  %p2602_p6 = scmp.le.s32.totalorder %s5734_s0, 0 }
  0x6e   :  { %132 = vst [vmem:[#allocation3] sm:$0xff] %v5001_v0  ;;  %133 = vst [vmem:[#allocation4] sm:$0xff] %v5001_v0  ;;  %v204_v1 = vld [vmem:[#allocation11 + $0x80] sm:$0xff] (!%p2602_p6)  ;;  %v205_v2 = vld [vmem:[#allocation11 + $0x88] sm:$0xff] (!%p2602_p6)  ;;  %vm5003_vm0 = vmmov (!%p2602_p6), 0  }
  0x6f   :  { %134 = vst [vmem:[#allocation5] sm:$0xff] %v5001_v0  ;;  %139 = sbr.rel (%p2602_p6) target bundleno = 2476 (0x9ac), region = 73  ;;  %v188_v3 = vld [vmem:[#allocation11] sm:$0xff] (!%p2602_p6)  ;;  %v4075_v4 = vpack.c.bf16 (!%p2602_p6), %v205_v2, %v204_v1  ;;  %v189_v5 = vld [vmem:[#allocation11 + $0x8] sm:$0xff] (!%p2602_p6)  ;;  %v206_v12 = vld [vmem:[#allocation11 + $0x90] sm:$0xff] (!%p2602_p6) }
  0x70   :  { %v236_v6 = vld [vmem:[#allocation11 + $0x180] sm:$0xff] (!%p2602_p6)  ;;  %v237_v7 = vld [vmem:[#allocation11 + $0x188] sm:$0xff] (!%p2602_p6)  ;;  %v4077_v8 = vpack.c.bf16 (!%p2602_p6), %v189_v5, %v188_v3  ;;  %v207_v14 = vld [vmem:[#allocation11 + $0x98] sm:$0xff] (!%p2602_p6) }
  0x71   :  { %v4107_v9 = vpack.c.bf16 (!%p2602_p6), %v237_v7, %v236_v6  ;;  %v220_v10 = vld [vmem:[#allocation11 + $0x100] sm:$0xff] (!%p2602_p6)  ;;  %v221_v11 = vld [vmem:[#allocation11 + $0x108] sm:$0xff] (!%p2602_p6)  ;;  %4076 = vmatprep.subr.bf16.mxu0 (!%p2602_p6), %v4075_v4  ;;  %v190_v15 = vld [vmem:[#allocation11 + $0x10] sm:$0xff] (!%p2602_p6)  ;;  %v4079_v17 = vpack.c.bf16 (!%p2602_p6), %v207_v14, %v206_v12 }
  0x72   :  { %v4109_v13 = vpack.c.bf16 (!%p2602_p6), %v221_v11, %v220_v10  ;;  %v191_v16 = vld [vmem:[#allocation11 + $0x18] sm:$0xff] (!%p2602_p6)  ;;  %4078 = vmatpush3.bf16.msra.mxu0 (!%p2602_p6), %v4077_v8  ;;  %v238_v19 = vld [vmem:[#allocation11 + $0x190] sm:$0xff] (!%p2602_p6)  ;;  %v208_v24 = vld [vmem:[#allocation11 + $0xa0] sm:$0xff] (!%p2602_p6) }
  0x73   :  { %4108 = vmatprep.subr.bf16.mxu1 (!%p2602_p6), %v4107_v9  ;;  %v4081_v18 = vpack.c.bf16 (!%p2602_p6), %v191_v16, %v190_v15  ;;  %v239_v20 = vld [vmem:[#allocation11 + $0x198] sm:$0xff] (!%p2602_p6)  ;;  %v222_v21 = vld [vmem:[#allocation11 + $0x110] sm:$0xff] (!%p2602_p6)  ;;  %v209_v25 = vld [vmem:[#allocation11 + $0xa8] sm:$0xff] (!%p2602_p6)  ;;  %4080 = vmatprep.subr.bf16.mxu0 (!%p2602_p6), %v4079_v17 }
  0x74   :  { %4110 = vmatpush3.bf16.msra.mxu1 (!%p2602_p6), %v4109_v13  ;;  %v4111_v22 = vpack.c.bf16 (!%p2602_p6), %v239_v20, %v238_v19  ;;  %v223_v23 = vld [vmem:[#allocation11 + $0x118] sm:$0xff] (!%p2602_p6)  ;;  %v4083_v27 = vpack.c.bf16 (!%p2602_p6), %v209_v25, %v208_v24  ;;  %v192_v28 = vld [vmem:[#allocation11 + $0x20] sm:$0xff] (!%p2602_p6)  ;;  %v193_v29 = vld [vmem:[#allocation11 + $0x28] sm:$0xff] (!%p2602_p6) }
  0x75   :  { %v4113_v26 = vpack.c.bf16 (!%p2602_p6), %v223_v23, %v222_v21  ;;  %v240_v30 = vld [vmem:[#allocation11 + $0x1a0] sm:$0xff] (!%p2602_p6)  ;;  %v241_v31 = vld [vmem:[#allocation11 + $0x1a8] sm:$0xff] (!%p2602_p6)  ;;  %v4085_v34 = vpack.c.bf16 (!%p2602_p6), %v193_v29, %v192_v28  ;;  %v210_v36 = vld [vmem:[#allocation11 + $0xb0] sm:$0xff] (!%p2602_p6) }
  0x76   :  { %4112 = vmatprep.subr.bf16.mxu1 %v4111_v22  ;;  %v224_v32 = vld [vmem:[#allocation11 + $0x120] sm:$0xff]  ;;  %v225_v33 = vld [vmem:[#allocation11 + $0x128] sm:$0xff]  ;;  %4082 = vmatpush3.bf16.msra.mxu0 %v4081_v18  ;;  %v4115_v35 = vpack.c.bf16 %v241_v31, %v240_v30  ;;  %v211_v37 = vld [vmem:[#allocation11 + $0xb8] sm:$0xff] }
  0x77   :  { %v194_v38 = vld [vmem:[#allocation11 + $0x30] sm:$0xff]  ;;  %4084 = vmatprep.subr.bf16.mxu0 %v4083_v27  ;;  %v4117_v39 = vpack.c.bf16 %v225_v33, %v224_v32  ;;  %v4087_v40 = vpack.c.bf16 %v211_v37, %v210_v36  ;;  %v195_v41 = vld [vmem:[#allocation11 + $0x38] sm:$0xff]  ;;  %v212_v47 = vld [vmem:[#allocation11 + $0xc0] sm:$0xff] }
  0x78   :  { %4114 = vmatpush3.bf16.msra.mxu1 %v4113_v26  ;;  %v242_v42 = vld [vmem:[#allocation11 + $0x1b0] sm:$0xff]  ;;  %v243_v43 = vld [vmem:[#allocation11 + $0x1b8] sm:$0xff]  ;;  %v213_v48 = vld [vmem:[#allocation11 + $0xc8] sm:$0xff]  ;;  %v4089_v49 = vpack.c.bf16 %v195_v41, %v194_v38 }
  0x79   :  { %4116 = vmatprep.subr.bf16.mxu1 %v4115_v35  ;;  %v4119_v44 = vpack.c.bf16 %v243_v43, %v242_v42  ;;  %v226_v45 = vld [vmem:[#allocation11 + $0x130] sm:$0xff]  ;;  %v227_v46 = vld [vmem:[#allocation11 + $0x138] sm:$0xff]  ;;  %v244_v50 = vld [vmem:[#allocation11 + $0x1c0] sm:$0xff]  ;;  %v4091_v53 = vpack.c.bf16 %v213_v48, %v212_v47 }
  0x7a   :  { %4086 = vmatpush3.bf16.msra.mxu0 %v4085_v34  ;;  %v245_v51 = vld [vmem:[#allocation11 + $0x1c8] sm:$0xff]  ;;  %v4121_v52 = vpack.c.bf16 %v227_v46, %v226_v45  ;;  %v196_v54 = vld [vmem:[#allocation11 + $0x40] sm:$0xff]  ;;  %v214_v59 = vld [vmem:[#allocation11 + $0xd0] sm:$0xff] }
  0x7b   :  { %4088 = vmatprep.subr.bf16.mxu0 %v4087_v40  ;;  %v197_v55 = vld [vmem:[#allocation11 + $0x48] sm:$0xff]  ;;  %v228_v56 = vld [vmem:[#allocation11 + $0x140] sm:$0xff]  ;;  %v4123_v57 = vpack.c.bf16 %v245_v51, %v244_v50  ;;  %v215_v60 = vld [vmem:[#allocation11 + $0xd8] sm:$0xff] }
  0x7c   :  { %4118 = vmatpush3.bf16.msra.mxu1 %v4117_v39  ;;  %v229_v58 = vld [vmem:[#allocation11 + $0x148] sm:$0xff]  ;;  %v246_v61 = vld [vmem:[#allocation11 + $0x1d0] sm:$0xff]  ;;  %v247_v62 = vld [vmem:[#allocation11 + $0x1d8] sm:$0xff]  ;;  %v4093_v63 = vpack.c.bf16 %v197_v55, %v196_v54  ;;  %v4095_v2 = vpack.c.bf16 %v215_v60, %v214_v59 }
  0x7d   :  { %4120 = vmatprep.subr.bf16.mxu1 %v4119_v44  ;;  %v4125_v1 = vpack.c.bf16 %v229_v58, %v228_v56  ;;  %v198_v3 = vld [vmem:[#allocation11 + $0x50] sm:$0xff]  ;;  %v199_v4 = vld [vmem:[#allocation11 + $0x58] sm:$0xff]  ;;  %v4127_v6 = vpack.c.bf16 %v247_v62, %v246_v61  ;;  %v216_v8 = vld [vmem:[#allocation11 + $0xe0] sm:$0xff] }
  0x7e   :  { %4090 = vmatpush3.bf16.msra.mxu0 %v4089_v49  ;;  %v230_v5 = vld [vmem:[#allocation11 + $0x150] sm:$0xff]  ;;  %v231_v7 = vld [vmem:[#allocation11 + $0x158] sm:$0xff]  ;;  %v217_v9 = vld [vmem:[#allocation11 + $0xe8] sm:$0xff]  ;;  %v4097_v12 = vpack.c.bf16 %v199_v4, %v198_v3 }
  0x7f   :  { %4092 = vmatprep.subr.bf16.mxu0 %v4091_v53  ;;  %v248_v10 = vld [vmem:[#allocation11 + $0x1e0] sm:$0xff]  ;;  %v249_v11 = vld [vmem:[#allocation11 + $0x1e8] sm:$0xff]  ;;  %v4129_v15 = vpack.c.bf16 %v231_v7, %v230_v5  ;;  %v4099_v16 = vpack.c.bf16 %v217_v9, %v216_v8  ;;  %v218_v21 = vld [vmem:[#allocation11 + $0xf0] sm:$0xff] }
  0x80   :  { %4122 = vmatpush3.bf16.msra.mxu1 %v4121_v52  ;;  %v200_v13 = vld [vmem:[#allocation11 + $0x60] sm:$0xff]  ;;  %v141_v14 = vld [vmem:[#allocation8 + $0x8] sm:$0xff]  ;;  %v4131_v20 = vpack.c.bf16 %v249_v11, %v248_v10  ;;  %v219_v22 = vld [vmem:[#allocation11 + $0xf8] sm:$0xff]  ;;  %v5002_v52 = vmov 0.0|0.0  }
  0x81   :  { %4124 = vmatprep.subr.bf16.mxu1 %v4123_v57  ;;  %v201_v17 = vld [vmem:[#allocation11 + $0x68] sm:$0xff]  ;;  %v232_v18 = vld [vmem:[#allocation11 + $0x160] sm:$0xff]  ;;  %355 = vmatprep.mubr.f32.mxu0 %v141_v14  ;;  %v143_v23 = vld [vmem:[#allocation8 + $0x18] sm:$0xff]  ;;  %v4103_v28 = vpack.c.bf16 %v219_v22, %v218_v21 }
  0x82   :  { %4094 = vmatpush3.bf16.msra.mxu0 %v4093_v63  ;;  %v233_v19 = vld [vmem:[#allocation11 + $0x168] sm:$0xff]  ;;  %v250_v24 = vld [vmem:[#allocation11 + $0x1f0] sm:$0xff]  ;;  %v251_v25 = vld [vmem:[#allocation11 + $0x1f8] sm:$0xff]  ;;  %460 = vmatprep.mubr.f32.mxu1 %v143_v23  ;;  %v4101_v26 = vpack.c.bf16 %v201_v17, %v200_v13 }
  0x83   :  { %4096 = vmatprep.subr.bf16.mxu0 %v4095_v2  ;;  %v4133_v27 = vpack.c.bf16 %v233_v19, %v232_v18  ;;  %v202_v29 = vld [vmem:[#allocation11 + $0x70] sm:$0xff]  ;;  %v203_v30 = vld [vmem:[#allocation11 + $0x78] sm:$0xff]  ;;  %v4135_v32 = vpack.c.bf16 %v251_v25, %v250_v24  ;;  %v268_v34 = vld [vmem:[#allocation11 + $0x280] sm:$0xff] }
  0x84   :  { %4126 = vmatpush3.bf16.msra.mxu1 %v4125_v1  ;;  %v234_v31 = vld [vmem:[#allocation11 + $0x170] sm:$0xff]  ;;  %v235_v33 = vld [vmem:[#allocation11 + $0x178] sm:$0xff]  ;;  %v269_v35 = vld [vmem:[#allocation11 + $0x288] sm:$0xff]  ;;  %v4105_v36 = vpack.c.bf16 %v203_v30, %v202_v29 }
  0x85   :  { %4128 = vmatprep.subr.bf16.mxu1 %v4127_v6  ;;  %v4137_v37 = vpack.c.bf16 %v235_v33, %v234_v31  ;;  %v4139_v38 = vpack.c.bf16 %v269_v35, %v268_v34  ;;  %v252_v39 = vld [vmem:[#allocation11 + $0x200] sm:$0xff]  ;;  %v253_v40 = vld [vmem:[#allocation11 + $0x208] sm:$0xff]  ;;  %v270_v41 = vld [vmem:[#allocation11 + $0x290] sm:$0xff] }
  0x86   :  { %4098 = vmatpush3.bf16.msra.mxu0 %v4097_v12  ;;  %v271_v42 = vld [vmem:[#allocation11 + $0x298] sm:$0xff]  ;;  %v140_v43 = vld [vmem:[#allocation8] sm:$0xff]  ;;  %v4141_v44 = vpack.c.bf16 %v253_v40, %v252_v39  ;;  %v142_v45 = vld [vmem:[#allocation8 + $0x10] sm:$0xff] }
  0x87   :  { %4100 = vmatprep.subr.bf16.mxu0 %v4099_v16  ;;  %v4143_v46 = vpack.c.bf16 %v271_v42, %v270_v41  ;;  %v254_v47 = vld [vmem:[#allocation11 + $0x210] sm:$0xff]  ;;  %v255_v48 = vld [vmem:[#allocation11 + $0x218] sm:$0xff]  ;;  %v272_v50 = vld [vmem:[#allocation11 + $0x2a0] sm:$0xff] }
  0x88   :  { %4130 = vmatpush3.bf16.msra.mxu1 %v4129_v15  ;;  %v147_v49 = vld [vmem:[#allocation8 + $0x38] sm:$0xff]  ;;  %v273_v51 = vld [vmem:[#allocation11 + $0x2a8] sm:$0xff]  ;;  %v146_v54 = vld [vmem:[#allocation8 + $0x30] sm:$0xff]  ;;  %v4145_v55 = vpack.c.bf16 %v255_v48, %v254_v47 }
  0x89   :  { %4132 = vmatprep.subr.bf16.mxu1 %v4131_v20  ;;  %v149_v53 = vld [vmem:[#allocation8 + $0x48] sm:$0xff]  ;;  %v148_v56 = vld [vmem:[#allocation8 + $0x40] sm:$0xff]  ;;  %v4147_v57 = vpack.c.bf16 %v273_v51, %v272_v50  ;;  %v274_v61 = vld [vmem:[#allocation11 + $0x2b0] sm:$0xff] }
  0x8a   :  { %4102 = vmatpush3.bf16.msra.mxu0 %v4101_v26  ;;  %v256_v58 = vld [vmem:[#allocation11 + $0x220] sm:$0xff]  ;;  %v257_v59 = vld [vmem:[#allocation11 + $0x228] sm:$0xff]  ;;  %v275_v62 = vld [vmem:[#allocation11 + $0x2b8] sm:$0xff] }
  0x8b   :  { %4104 = vmatprep.subr.bf16.mxu0 %v4103_v28  ;;  %v153_v60 = vld [vmem:[#allocation8 + $0x68] sm:$0xff]  ;;  %v155_v63 = vld [vmem:[#allocation8 + $0x78] sm:$0xff]  ;;  %v152_v1 = vld [vmem:[#allocation8 + $0x60] sm:$0xff]  ;;  %v4149_v2 = vpack.c.bf16 %v257_v59, %v256_v58  ;;  %v4151_v4 = vpack.c.bf16 %v275_v62, %v274_v61  ;;  %v5004_v61 = vmov 0.0  }
  0x8c   :  { %4134 = vmatpush3.bf16.msra.mxu1 %v4133_v27  ;;  %v154_v3 = vld [vmem:[#allocation8 + $0x70] sm:$0xff]  ;;  %v259_v6 = vld [vmem:[#allocation11 + $0x238] sm:$0xff]  ;;  %v276_v8 = vld [vmem:[#allocation11 + $0x2c0] sm:$0xff] }
  0x8d   :  { %4136 = vmatprep.subr.bf16.mxu1 %v4135_v32  ;;  %v258_v5 = vld [vmem:[#allocation11 + $0x230] sm:$0xff]  ;;  %v159_v7 = vld [vmem:[#allocation8 + $0x98] sm:$0xff]  ;;  %v277_v9 = vld [vmem:[#allocation11 + $0x2c8] sm:$0xff] }
  0x8e   :  { %4106 = vmatpush3.bf16.msra.mxu0 %v4105_v36  ;;  %v161_v10 = vld [vmem:[#allocation8 + $0xa8] sm:$0xff]  ;;  %v158_v11 = vld [vmem:[#allocation8 + $0x90] sm:$0xff]  ;;  %v4153_v12 = vpack.c.bf16 %v259_v6, %v258_v5  ;;  %v160_v13 = vld [vmem:[#allocation8 + $0xa0] sm:$0xff]  ;;  %v4155_v14 = vpack.c.bf16 %v277_v9, %v276_v8 }
  0x8f   :  { %4140 = vmatprep.subr.bf16.mxu0 %v4139_v38  ;;  %v260_v15 = vld [vmem:[#allocation11 + $0x240] sm:$0xff]  ;;  %v261_v16 = vld [vmem:[#allocation11 + $0x248] sm:$0xff]  ;;  %v278_v18 = vld [vmem:[#allocation11 + $0x2d0] sm:$0xff] }
  0x90   :  { %4138 = vmatpush3.bf16.msra.mxu1 %v4137_v37  ;;  %v165_v17 = vld [vmem:[#allocation8 + $0xc8] sm:$0xff]  ;;  %v279_v19 = vld [vmem:[#allocation11 + $0x2d8] sm:$0xff]  ;;  %v164_v21 = vld [vmem:[#allocation8 + $0xc0] sm:$0xff]  ;;  %v4157_v22 = vpack.c.bf16 %v261_v16, %v260_v15 }
  0x91   :  { %4171 = vmatprep.subr.bf16.mxu1 %v5002_v52  ;;  %356 = vmatmul.mubr.f32.vlgmr.msra.gmra.mrb[0].mxu0 %v140_v43  ;;  %v167_v20 = vld [vmem:[#allocation8 + $0xd8] sm:$0xff]  ;;  %v166_v23 = vld [vmem:[#allocation8 + $0xd0] sm:$0xff]  ;;  %v4159_v24 = vpack.c.bf16 %v279_v19, %v278_v18  ;;  %v280_v28 = vld [vmem:[#allocation11 + $0x2e0] sm:$0xff] }
  0x92   :  { %4142 = vmatpush3.bf16.msra.mxu0 %v4141_v44  ;;  %360 = vmatprep.mubr.f32.mxu0 %v147_v49  ;;  %v262_v25 = vld [vmem:[#allocation11 + $0x250] sm:$0xff]  ;;  %v263_v26 = vld [vmem:[#allocation11 + $0x258] sm:$0xff]  ;;  %v281_v29 = vld [vmem:[#allocation11 + $0x2e8] sm:$0xff] }
  0x93   :  { %461 = vmatmul.mubr.f32.vlgmr.msra.gmra.mrb[0].mxu1 %v142_v45  ;;  %4144 = vmatprep.subr.bf16.mxu0 %v4143_v46  ;;  %v171_v27 = vld [vmem:[#allocation8 + $0xf8] sm:$0xff]  ;;  %v173_v30 = vld [vmem:[#allocation8 + $0x108] sm:$0xff]  ;;  %v170_v31 = vld [vmem:[#allocation8 + $0xf0] sm:$0xff]  ;;  %v4161_v32 = vpack.c.bf16 %v263_v26, %v262_v25  ;;  %v4163_v34 = vpack.c.bf16 %v281_v29, %v280_v28 }
  0x94   :  { %465 = vmatprep.mubr.f32.mxu1 %v149_v53  ;;  %v172_v33 = vld [vmem:[#allocation8 + $0x100] sm:$0xff]  ;;  %v265_v36 = vld [vmem:[#allocation11 + $0x268] sm:$0xff]  ;;  %v282_v38 = vld [vmem:[#allocation11 + $0x2f0] sm:$0xff] }
  0x95   :  { %361 = vmatmul.mubr.f32.gmra.mrb[2].mxu0 %v146_v54  ;;  %v264_v35 = vld [vmem:[#allocation11 + $0x260] sm:$0xff]  ;;  %v177_v37 = vld [vmem:[#allocation8 + $0x128] sm:$0xff]  ;;  %v283_v39 = vld [vmem:[#allocation11 + $0x2f8] sm:$0xff] }
  0x96   :  { %4146 = vmatpush3.bf16.msra.mxu0 %v4145_v55  ;;  %365 = vmatprep.mubr.f32.mxu0 %v153_v60  ;;  %v179_v40 = vld [vmem:[#allocation8 + $0x138] sm:$0xff]  ;;  %v176_v41 = vld [vmem:[#allocation8 + $0x120] sm:$0xff]  ;;  %v4165_v42 = vpack.c.bf16 %v265_v36, %v264_v35  ;;  %v178_v43 = vld [vmem:[#allocation8 + $0x130] sm:$0xff]  ;;  %v4167_v44 = vpack.c.bf16 %v283_v39, %v282_v38 }
  0x97   :  { %466 = vmatmul.mubr.f32.gmra.mrb[2].mxu1 %v148_v56  ;;  %4148 = vmatprep.subr.bf16.mxu0 %v4147_v57  ;;  %v266_v45 = vld [vmem:[#allocation11 + $0x270] sm:$0xff]  ;;  %v267_v46 = vld [vmem:[#allocation11 + $0x278] sm:$0xff]  ;;  %v185_v48 = vld [vmem:[#allocation8 + $0x168] sm:$0xff] }
  0x98   :  { %470 = vmatprep.mubr.f32.mxu1 %v155_v63  ;;  %v183_v47 = vld [vmem:[#allocation8 + $0x158] sm:$0xff]  ;;  %v182_v49 = vld [vmem:[#allocation8 + $0x150] sm:$0xff]  ;;  %v4169_v50 = vpack.c.bf16 %v267_v46, %v266_v45  ;;  %v184_v51 = vld [vmem:[#allocation8 + $0x160] sm:$0xff] }
  0x99   :  { %366 = vmatmul.mubr.f32.gmra.mrb[4].mxu0 %v152_v1  ;;  %v706_v53 = vld [vmem:[#allocation13] sm:$0xff]  ;;  %v707_v54 = vld [vmem:[#allocation13 + $0x8] sm:$0xff]  ;;  %v151_v58 = vld [vmem:[#allocation8 + $0x58] sm:$0xff] }
  0x9a   :  { %4150 = vmatpush3.bf16.msra.mxu0 %v4149_v2  ;;  %370 = vmatprep.mubr.f32.mxu0 %v159_v7  ;;  %v145_v55 = vld [vmem:[#allocation8 + $0x28] sm:$0xff]  ;;  %v144_v56 = vld [vmem:[#allocation8 + $0x20] sm:$0xff]  ;;  %v5163_v57 = vpack.c.bf16 %v707_v54, %v706_v53  ;;  %v708_v59 = vld [vmem:[#allocation13 + $0x10] sm:$0xff] }
  0x9b   :  { %471 = vmatmul.mubr.f32.gmra.mrb[4].mxu1 %v154_v3  ;;  %4152 = vmatprep.subr.bf16.mxu0 %v4151_v4  ;;  %v709_v60 = vld [vmem:[#allocation13 + $0x18] sm:$0xff]  ;;  %v150_v62 = vld [vmem:[#allocation8 + $0x50] sm:$0xff]  ;;  %v157_v1 = vld [vmem:[#allocation8 + $0x88] sm:$0xff] }
  0x9c   :  { %475 = vmatprep.mubr.f32.mxu1 %v161_v10  ;;  %v5169_v63 = vpack.c.bf16 %v709_v60, %v708_v59  ;;  %v710_v2 = vld [vmem:[#allocation13 + $0x20] sm:$0xff]  ;;  %v711_v3 = vld [vmem:[#allocation13 + $0x28] sm:$0xff]  ;;  %v163_v6 = vld [vmem:[#allocation8 + $0xb8] sm:$0xff] }
  0x9d   :  { %371 = vmatmul.mubr.f32.gmra.mrb[6].mxu0 %v158_v11  ;;  %v156_v4 = vld [vmem:[#allocation8 + $0x80] sm:$0xff]  ;;  %v5173_v5 = vpack.c.bf16 %v711_v3, %v710_v2  ;;  %v712_v7 = vld [vmem:[#allocation13 + $0x30] sm:$0xff]  ;;  %v713_v8 = vld [vmem:[#allocation13 + $0x38] sm:$0xff] }
  0x9e   :  { %4154 = vmatpush3.bf16.msra.mxu0 %v4153_v12  ;;  %375 = vmatprep.mubr.f32.mxu0 %v165_v17  ;;  %v162_v9 = vld [vmem:[#allocation8 + $0xb0] sm:$0xff]  ;;  %v5177_v10 = vpack.c.bf16 %v713_v8, %v712_v7  ;;  %v169_v11 = vld [vmem:[#allocation8 + $0xe8] sm:$0xff]  ;;  %v714_v12 = vld [vmem:[#allocation13 + $0x40] sm:$0xff] }
  0x9f   :  { %476 = vmatmul.mubr.f32.gmra.mrb[6].mxu1 %v160_v13  ;;  %4156 = vmatprep.subr.bf16.mxu0 %v4155_v14  ;;  %v715_v13 = vld [vmem:[#allocation13 + $0x48] sm:$0xff]  ;;  %v168_v14 = vld [vmem:[#allocation8 + $0xe0] sm:$0xff]  ;;  %v175_v16 = vld [vmem:[#allocation8 + $0x118] sm:$0xff] }
  0xa0   :  { %480 = vmatprep.mubr.f32.mxu1 %v167_v20  ;;  %v5181_v15 = vpack.c.bf16 %v715_v13, %v714_v12  ;;  %v716_v17 = vld [vmem:[#allocation13 + $0x50] sm:$0xff]  ;;  %v717_v18 = vld [vmem:[#allocation13 + $0x58] sm:$0xff]  ;;  %v624_v38 = vld [vmem:[#allocation16 + $0x20] sm:$0xff] }
  0xa1   :  { %376 = vmatmul.mubr.f32.gmra.mrb[8].mxu0 %v164_v21  ;;  %v174_v19 = vld [vmem:[#allocation8 + $0x110] sm:$0xff]  ;;  %v5185_v20 = vpack.c.bf16 %v717_v18, %v716_v17  ;;  %v181_v21 = vld [vmem:[#allocation8 + $0x148] sm:$0xff]  ;;  %v187_v26 = vld [vmem:[#allocation8 + $0x178] sm:$0xff] }
  0xa2   :  { %4158 = vmatpush3.bf16.msra.mxu0 %v4157_v22  ;;  %380 = vmatprep.mubr.f32.mxu0 %v171_v27  ;;  %v718_v22 = vld [vmem:[#allocation13 + $0x60] sm:$0xff]  ;;  %v720_v27 = vld [vmem:[#allocation13 + $0x70] sm:$0xff]  ;;  %v721_v28 = vld [vmem:[#allocation13 + $0x78] sm:$0xff] }
  0xa3   :  { %481 = vmatmul.mubr.f32.gmra.mrb[8].mxu1 %v166_v23  ;;  %4160 = vmatprep.subr.bf16.mxu0 %v4159_v24  ;;  %v719_v23 = vld [vmem:[#allocation13 + $0x68] sm:$0xff]  ;;  %v180_v24 = vld [vmem:[#allocation8 + $0x140] sm:$0xff]  ;;  %v186_v29 = vld [vmem:[#allocation8 + $0x170] sm:$0xff] }
  0xa4   :  { %485 = vmatprep.mubr.f32.mxu1 %v173_v30  ;;  %v5189_v25 = vpack.c.bf16 %v719_v23, %v718_v22  ;;  %v5193_v30 = vpack.c.bf16 %v721_v28, %v720_v27  ;;  %v622_v35 = vld [vmem:[#allocation16 + $0x10] sm:$0xff]  ;;  %v623_v36 = vld [vmem:[#allocation16 + $0x18] sm:$0xff]  ;;  %v625_v39 = vld [vmem:[#allocation16 + $0x28] sm:$0xff]  ;;  %v5005_v28 = vmov 0  }
  0xa5   :  { %381 = vmatmul.mubr.f32.gmra.mrb[10].mxu0 %v170_v31  ;;  %v616_v31 = vld [vmem:[#allocation3] sm:$0xff]  ;;  %v634_v54 = vld [vmem:[#allocation16 + $0x70] sm:$0xff]  ;;  %v797_v2 = vld [vmem:[#allocation14 + $0x18] sm:$0xff]  ;;  %4789 = vset.pattern.permute.xlu0 %v5005_v28 }
  0xa6   :  { %4162 = vmatpush3.bf16.msra.mxu0 %v4161_v32  ;;  %385 = vmatprep.mubr.f32.mxu0 %v177_v37  ;;  %v620_v32 = vld [vmem:[#allocation16] sm:$0xff]  ;;  %v5208_v37 = vpack.c.bf16 %v623_v36, %v622_v35  ;;  %v629_v45 = vld [vmem:[#allocation16 + $0x48] sm:$0xff]  ;;  %v800_v8 = vld [vmem:[#allocation14 + $0x30] sm:$0xff] }
  0xa7   :  { %486 = vmatmul.mubr.f32.gmra.mrb[10].mxu1 %v172_v33  ;;  %4164 = vmatprep.subr.bf16.mxu0 %v4163_v34  ;;  %v621_v33 = vld [vmem:[#allocation16 + $0x8] sm:$0xff]  ;;  %v802_v12 = vld [vmem:[#allocation14 + $0x40] sm:$0xff]  ;;  %v805_v17 = vld [vmem:[#allocation14 + $0x58] sm:$0xff] }
  0xa8   :  { %490 = vmatprep.mubr.f32.mxu1 %v179_v40  ;;  %v5202_v34 = vpack.c.bf16 %v621_v33, %v620_v32  ;;  %v5214_v40 = vpack.c.bf16 %v625_v39, %v624_v38  ;;  %v795_v59 = vld [vmem:[#allocation14 + $0x8] sm:$0xff]  ;;  %v808_v23 = vld [vmem:[#allocation14 + $0x70] sm:$0xff]  ;;  %4790 = vset.pattern.permute.xlu1 %v5005_v28 }
  0xa9   :  { %386 = vmatmul.mubr.f32.gmra.mrb[12].mxu0 %v176_v41  ;;  %v626_v41 = vld [vmem:[#allocation16 + $0x30] sm:$0xff]  ;;  %v803_v13 = vld [vmem:[#allocation14 + $0x48] sm:$0xff] }
  0xaa   :  { %4166 = vmatpush3.bf16.msra.mxu0 %v4165_v42  ;;  %390 = vmatprep.mubr.f32.mxu0 %v183_v47  ;;  %v627_v42 = vld [vmem:[#allocation16 + $0x38] sm:$0xff]  ;;  %v630_v47 = vld [vmem:[#allocation16 + $0x50] sm:$0xff]  ;;  %v614_v27 = vld [vmem:[%s5735_s1] sm:$0xff] }
  0xab   :  { %491 = vmatmul.mubr.f32.gmra.mrb[12].mxu1 %v178_v43  ;;  %4168 = vmatprep.subr.bf16.mxu0 %v4167_v44  ;;  %v5220_v43 = vpack.c.bf16 %v627_v42, %v626_v41  ;;  %v628_v44 = vld [vmem:[#allocation16 + $0x40] sm:$0xff]  ;;  %v2603_v33 = vld [vmem:[%s5738_s4] ss:$0 sm:$0xff] }
  0xac   :  { %495 = vmatprep.mubr.f32.mxu1 %v185_v48  ;;  %4173 = vmatpush3.bf16.msra.mxu1 %v5202_v34  ;;  %v5226_v46 = vpack.c.bf16 %v629_v45, %v628_v44  ;;  %v631_v48 = vld [vmem:[#allocation16 + $0x58] sm:$0xff] }
  0xad   :  { %391 = vmatmul.mubr.f32.gmra.mrb[14].mxu0 %v182_v49  ;;  %4174 = vmatprep.subr.bf16.mxu1 %v5002_v52  ;;  %v5232_v49 = vpack.c.bf16 %v631_v48, %v630_v47 }
  0xae   :  { %4170 = vmatpush3.bf16.msra.mxu0 %v4169_v50  ;;  %565 = vmatprep.mubr.f32.mxu0 %v145_v55  ;;  %v632_v50 = vld [vmem:[#allocation16 + $0x60] sm:$0xff]  ;;  %v635_v55 = vld [vmem:[#allocation16 + $0x78] sm:$0xff] }
  0xaf   :  { %496 = vmatmul.mubr.f32.gmra.mrb[14].mxu1 %v184_v51  ;;  %4195 = vmatprep.subr.bf16.mxu0 %v5002_v52  ;;  %v633_v51 = vld [vmem:[#allocation16 + $0x68] sm:$0xff] }
  0xb0   :  { %3232 = vmatprep.mubr.msk.f32.mxu1 %vm5003_vm0, %v5004_v61  ;;  %4176 = vmatpush3.bf16.msra.mxu1 %v5208_v37  ;;  %v5238_v53 = vpack.c.bf16 %v633_v51, %v632_v50 }
  0xb1   :  { %566 = vmatmul.mubr.f32.vlgmr.msra.gmra.mrb[16].mxu0 %v144_v56  ;;  %4177 = vmatprep.subr.bf16.mxu1 %v5002_v52  ;;  %v5244_v56 = vpack.c.bf16 %v635_v55, %v634_v54 }
  0xb2   :  { %4197 = vmatpush3.bf16.msra.mxu0 %v5163_v57  ;;  %570 = vmatprep.mubr.f32.mxu0 %v151_v58  ;;  %v794_v58 = vld [vmem:[#allocation14] sm:$0xff] }
  0xb3   :  { %4198 = vmatprep.subr.bf16.mxu0 %v5002_v52  ;;  %v5250_v60 = vpack.c.bf16 %v795_v59, %v794_v58 }
  0xb4   :  { %4179 = vmatpush3.bf16.msra.mxu1 %v5214_v40 }
  0xb5   :  { %571 = vmatmul.mubr.f32.gmra.mrb[18].mxu0 %v150_v62  ;;  %4180 = vmatprep.subr.bf16.mxu1 %v5002_v52  ;;  %v617_v62 = vld [vmem:[#allocation4] sm:$0xff] }
  0xb6   :  { %4200 = vmatpush3.bf16.msra.mxu0 %v5169_v63  ;;  %575 = vmatprep.mubr.f32.mxu0 %v157_v1  ;;  %v796_v1 = vld [vmem:[#allocation14 + $0x10] sm:$0xff] }
  0xb7   :  { %4201 = vmatprep.subr.bf16.mxu0 %v5002_v52  ;;  %v5256_v3 = vpack.c.bf16 %v797_v2, %v796_v1 }
  0xb8   :  { %4182 = vmatpush3.bf16.msra.mxu1 %v5220_v43 }
  0xb9   :  { %576 = vmatmul.mubr.f32.gmra.mrb[20].mxu0 %v156_v4  ;;  %4183 = vmatprep.subr.bf16.mxu1 %v5002_v52  ;;  %v798_v4 = vld [vmem:[#allocation14 + $0x20] sm:$0xff] }
  0xba   :  { %4203 = vmatpush3.bf16.msra.mxu0 %v5173_v5  ;;  %580 = vmatprep.mubr.f32.mxu0 %v163_v6  ;;  %v799_v6 = vld [vmem:[#allocation14 + $0x28] sm:$0xff] }
  0xbb   :  { %4204 = vmatprep.subr.bf16.mxu0 %v5002_v52  ;;  %v5260_v7 = vpack.c.bf16 %v799_v6, %v798_v4 }
  0xbc   :  { %4185 = vmatpush3.bf16.msra.mxu1 %v5226_v46 }
  0xbd   :  { %581 = vmatmul.mubr.f32.gmra.mrb[22].mxu0 %v162_v9  ;;  %4186 = vmatprep.subr.bf16.mxu1 %v5002_v52  ;;  %v801_v9 = vld [vmem:[#allocation14 + $0x38] sm:$0xff] }
  0xbe   :  { %4206 = vmatpush3.bf16.msra.mxu0 %v5177_v10  ;;  %585 = vmatprep.mubr.f32.mxu0 %v169_v11  ;;  %v5264_v11 = vpack.c.bf16 %v801_v9, %v800_v8 }
  0xbf   :  { %4207 = vmatprep.subr.bf16.mxu0 %v5002_v52 }
  0xc0   :  { %4188 = vmatpush3.bf16.msra.mxu1 %v5232_v49 }
  0xc1   :  { %586 = vmatmul.mubr.f32.gmra.mrb[24].mxu0 %v168_v14  ;;  %4189 = vmatprep.subr.bf16.mxu1 %v5002_v52  ;;  %v5268_v14 = vpack.c.bf16 %v803_v13, %v802_v12 }
  0xc2   :  { %4209 = vmatpush3.bf16.msra.mxu0 %v5181_v15  ;;  %590 = vmatprep.mubr.f32.mxu0 %v175_v16  ;;  %v804_v16 = vld [vmem:[#allocation14 + $0x50] sm:$0xff] }
  0xc3   :  { %4210 = vmatprep.subr.bf16.mxu0 %v5002_v52  ;;  %v5272_v18 = vpack.c.bf16 %v805_v17, %v804_v16 }
  0xc4   :  { %4191 = vmatpush3.bf16.msra.mxu1 %v5238_v53 }
  0xc5   :  { %591 = vmatmul.mubr.f32.gmra.mrb[26].mxu0 %v174_v19  ;;  %4192 = vmatprep.subr.bf16.mxu1 %v5002_v52  ;;  %v806_v19 = vld [vmem:[#allocation14 + $0x60] sm:$0xff] }
  0xc6   :  { %4212 = vmatpush3.bf16.msra.mxu0 %v5185_v20  ;;  %595 = vmatprep.mubr.f32.mxu0 %v181_v21  ;;  %v807_v21 = vld [vmem:[#allocation14 + $0x68] sm:$0xff] }
  0xc7   :  { %4213 = vmatprep.subr.bf16.mxu0 %v5002_v52  ;;  %v5276_v22 = vpack.c.bf16 %v807_v21, %v806_v19 }
  0xc8   :  { %4194 = vmatpush3.bf16.msra.mxu1 %v5244_v56 }
  0xc9   :  { %596 = vmatmul.mubr.f32.gmra.mrb[28].mxu0 %v180_v24  ;;  %4219 = vmatprep.subr.bf16.mxu1 %v5002_v52  ;;  %v809_v24 = vld [vmem:[#allocation14 + $0x78] sm:$0xff] }
  0xca   :  { %4215 = vmatpush3.bf16.msra.mxu0 %v5189_v25  ;;  %600 = vmatprep.mubr.f32.mxu0 %v187_v26  ;;  %v5279_v26 = vpack.c.bf16 %v809_v24, %v808_v23 }
  0xcb   :  { %4216 = vmatprep.subr.bf16.mxu0 %v5002_v52  ;;  %3233 = vmatmul.mubr.f32.vlgmr.msra.gmra.mrb[16].mxu1 %v617_v62 }
  0xcc   :  { %4221 = vmatpush3.bf16.msra.mxu1 %v5250_v60  ;;  %3302 = vmatprep.mubr.msk.f32.mxu1 %vm5003_vm0, %v5004_v61 }
  0xcd   :  { %601 = vmatmul.mubr.f32.gmra.mrb[30].mxu0 %v186_v29  ;;  %4222 = vmatprep.subr.bf16.mxu1 %v5002_v52  ;;  %v5288_v29 = vadd.s32 4294967295, %v614_v27 }
  0xce   :  { %4218 = vmatpush3.bf16.msra.mxu0 %v5193_v30  ;;  %3267 = vmatprep.mubr.msk.f32.mxu0 %vm5003_vm0, %v5004_v61 }
  0xcf   :  { %4243 = vmatprep.subr.bf16.mxu0 %v5002_v52  ;;  %vm890_vm1 = vcmp.eq.s32.totalorder %v5288_v29, 0  ;;  %vm1115_vm2 = vcmp.eq.s32.totalorder %v5288_v29, 1  ;;  %vm1340_vm3 = vcmp.eq.s32.totalorder %v5288_v29, 2  ;;  %vm1565_vm6 = vcmp.eq.s32.totalorder %v5288_v29, 3 }
  0xd0   :  { %4224 = vmatpush3.bf16.msra.mxu1 %v5256_v3  ;;  %vm1790_vm8 = vcmp.eq.s32.totalorder %v5288_v29, 4  ;;  %vm2015_vm10 = vcmp.eq.s32.totalorder %v5288_v29, 5  ;;  %vm2240_vm12 = vcmp.eq.s32.totalorder %v5288_v29, 6  ;;  %vm2465_vm14 = vcmp.eq.s32.totalorder %v5288_v29, 7 }
  0xd1   :  { %3268 = vmatmul.mubr.f32.vlgmr.msra.gmra.mrb[32].mxu0 %v616_v31  ;;  %4225 = vmatprep.subr.bf16.mxu1 %v5002_v52  ;;  %v891_v31 = vsel %vm890_vm1, 1, %v5005_v28 }
  0xd2   :  { %3337 = vmatprep.mubr.msk.f32.mxu0 %vm5003_vm0, %v5004_v61  ;;  %4245 = vmatpush3.bf16.msra.mxu0 %v5202_v34 }
  0xd3   :  { %4246 = vmatprep.subr.bf16.mxu0 %v5002_v52  ;;  %893 = vperm.xlu0 %4789, %v891_v31  }
  0xd4   :  { %4227 = vmatpush3.bf16.msra.mxu1 %v5260_v7 }
  0xd5   :  { %4228 = vmatprep.subr.bf16.mxu1 %v5002_v52 }
  0xd6   :  { %4248 = vmatpush3.bf16.msra.mxu0 %v5208_v37 }
  0xd7   :  { %4249 = vmatprep.subr.bf16.mxu0 %v5002_v52 }
  0xd8   :  { %4230 = vmatpush3.bf16.msra.mxu1 %v5264_v11 }
  0xd9   :  { %4231 = vmatprep.subr.bf16.mxu1 %v5002_v52 }
  0xda   :  { %4251 = vmatpush3.bf16.msra.mxu0 %v5214_v40 }
  0xdb   :  { %4252 = vmatprep.subr.bf16.mxu0 %v5002_v52 }
  0xdc   :  { %4233 = vmatpush3.bf16.msra.mxu1 %v5268_v14 }
  0xdd   :  { %4234 = vmatprep.subr.bf16.mxu1 %v5002_v52 }
  0xde   :  { %4254 = vmatpush3.bf16.msra.mxu0 %v5220_v43 }
  0xdf   :  { %4255 = vmatprep.subr.bf16.mxu0 %v5002_v52 }
  0xe0   :  { %4236 = vmatpush3.bf16.msra.mxu1 %v5272_v18 }
  0xe1   :  { %4237 = vmatprep.subr.bf16.mxu1 %v5002_v52 }
  0xe2   :  { %4257 = vmatpush3.bf16.msra.mxu0 %v5226_v46 }
  0xe3   :  { %4258 = vmatprep.subr.bf16.mxu0 %v5002_v52 }
  0xe4   :  { %4239 = vmatpush3.bf16.msra.mxu1 %v5276_v22 }
  0xe5   :  { %4240 = vmatprep.subr.bf16.mxu1 %v5002_v52 }
  0xe6   :  { %4260 = vmatpush3.bf16.msra.mxu0 %v5232_v49 }
  0xe7   :  { %4261 = vmatprep.subr.bf16.mxu0 %v5002_v52 }
  0xe8   :  { %4242 = vmatpush3.bf16.msra.mxu1 %v5279_v26 }
  0xe9   :  { %4267 = vmatprep.subr.bf16.mxu1 %v5002_v52 }
  0xea   :  { %4263 = vmatpush3.bf16.msra.mxu0 %v5238_v53 }
  0xeb   :  { %4264 = vmatprep.subr.bf16.mxu0 %v5002_v52 }
  0xee   :  { %4266 = vmatpush3.bf16.msra.mxu0 %v5244_v56 }
  0xef   :  { %4291 = vmatprep.subr.bf16.mxu0 %v5002_v52 }
 0x164   :  { %v2639_v32 = vpop.f32.mrb[0].mxu0 }
 0x165   :  { %v2640_v35 = vpop.f32.mrb[1].mxu0 }
 0x166   :  { %v2695_v36 = vpop.f32.mrb[0].mxu1  ;;  %v2641_v38 = vadd.f32 %v2640_v35, %v2639_v32 }
 0x167   :  { %v2696_v39 = vpop.f32.mrb[1].mxu1 }
 0x168   :  { %v2697_v41 = vadd.f32 %v2696_v39, %v2695_v36  ;;  %v358_v42 = vadd.f32 %v2641_v38, %v2603_v33  ;;  %v2642_v44 = vpop.f32.mrb[2].mxu0 }
 0x169   :  { %v2643_v45 = vpop.f32.mrb[3].mxu0 }
 0x16a   :  { %v2698_v47 = vpop.f32.mrb[2].mxu1  ;;  %v463_v48 = vadd.f32 %v2697_v41, %v358_v42  ;;  %v2644_v50 = vadd.f32 %v2643_v45, %v2642_v44 }
 0x16b   :  { %v2699_v51 = vpop.f32.mrb[3].mxu1 }
 0x16c   :  { %v2700_v54 = vadd.f32 %v2699_v51, %v2698_v47  ;;  %v363_v55 = vadd.f32 %v2644_v50, %v2603_v33  ;;  %v2645_v58 = vpop.f32.mrb[4].mxu0 }
 0x16d   :  { %v2646_v59 = vpop.f32.mrb[5].mxu0 }
 0x16e   :  { %v2701_v62 = vpop.f32.mrb[4].mxu1  ;;  %v468_v1 = vadd.f32 %v2700_v54, %v363_v55  ;;  %v2647_v2 = vadd.f32 %v2646_v59, %v2645_v58 }
 0x16f   :  { %v2702_v4 = vpop.f32.mrb[5].mxu1 }
 0x170   :  { %v2703_v6 = vadd.f32 %v2702_v4, %v2701_v62  ;;  %v368_v8 = vadd.f32 %v2647_v2, %v2603_v33  ;;  %v2648_v9 = vpop.f32.mrb[6].mxu0 }
 0x171   :  { %v2649_v12 = vpop.f32.mrb[7].mxu0 }
 0x172   :  { %v2704_v13 = vpop.f32.mrb[6].mxu1  ;;  %v473_v16 = vadd.f32 %v2703_v6, %v368_v8  ;;  %v2650_v17 = vadd.f32 %v2649_v12, %v2648_v9 }
 0x173   :  { %v2705_v19 = vpop.f32.mrb[7].mxu1 }
 0x174   :  { %v2706_v21 = vadd.f32 %v2705_v19, %v2704_v13  ;;  %v373_v23 = vadd.f32 %v2650_v17, %v2603_v33  ;;  %v2651_v24 = vpop.f32.mrb[8].mxu0 }
 0x175   :  { %v2652_v27 = vpop.f32.mrb[9].mxu0 }
 0x176   :  { %v2707_v31 = vpop.f32.mrb[8].mxu1  ;;  %v478_v32 = vadd.f32 %v2706_v21, %v373_v23  ;;  %v2653_v35 = vadd.f32 %v2652_v27, %v2651_v24 }
 0x177   :  { %v2708_v36 = vpop.f32.mrb[9].mxu1 }
 0x178   :  { %v2709_v38 = vadd.f32 %v2708_v36, %v2707_v31  ;;  %v378_v39 = vadd.f32 %v2653_v35, %v2603_v33  ;;  %v2654_v41 = vpop.f32.mrb[10].mxu0 }
 0x179   :  { %v2655_v42 = vpop.f32.mrb[11].mxu0 }
 0x17a   :  { %v2710_v44 = vpop.f32.mrb[10].mxu1  ;;  %v483_v45 = vadd.f32 %v2709_v38, %v378_v39  ;;  %v2656_v47 = vadd.f32 %v2655_v42, %v2654_v41 }
 0x17b   :  { %v2711_v50 = vpop.f32.mrb[11].mxu1 }
 0x17c   :  { %v2712_v51 = vadd.f32 %v2711_v50, %v2710_v44  ;;  %v383_v54 = vadd.f32 %v2656_v47, %v2603_v33  ;;  %v2657_v55 = vpop.f32.mrb[12].mxu0 }
 0x17d   :  { %v2658_v58 = vpop.f32.mrb[13].mxu0 }
 0x17e   :  { %v2713_v59 = vpop.f32.mrb[12].mxu1  ;;  %v488_v62 = vadd.f32 %v2712_v51, %v383_v54  ;;  %v2659_v2 = vadd.f32 %v2658_v58, %v2657_v55 }
 0x17f   :  { %v2714_v4 = vpop.f32.mrb[13].mxu1 }
 0x180   :  { %v2715_v6 = vadd.f32 %v2714_v4, %v2713_v59  ;;  %v388_v8 = vadd.f32 %v2659_v2, %v2603_v33  ;;  %v2660_v9 = vpop.f32.mrb[14].mxu0 }
 0x181   :  { %v2661_v12 = vpop.f32.mrb[15].mxu0 }
 0x182   :  { %v2716_v13 = vpop.f32.mrb[14].mxu1  ;;  %v493_v17 = vadd.f32 %v2715_v6, %v388_v8  ;;  %v2662_v19 = vadd.f32 %v2661_v12, %v2660_v9 }
 0x183   :  { %v2717_v21 = vpop.f32.mrb[15].mxu1 }
 0x184   :  { %v2718_v23 = vadd.f32 %v2717_v21, %v2716_v13  ;;  %v393_v24 = vadd.f32 %v2662_v19, %v2603_v33  ;;  %v2751_v27 = vpop.f32.mrb[16].mxu0 }
 0x185   :  { %v2752_v31 = vpop.f32.mrb[17].mxu0 }
 0x186   :  { %v498_v35 = vadd.f32 %v2718_v23, %v393_v24  ;;  %v2753_v36 = vadd.f32 %v2752_v31, %v2751_v27 }
 0x188   :  { %v2754_v38 = vpop.f32.mrb[18].mxu0  ;;  %v568_v39 = vadd.f32 %v2753_v36, %v463_v48 }
 0x189   :  { %v2755_v41 = vpop.f32.mrb[19].mxu0 }
 0x18a   :  { %v2756_v42 = vadd.f32 %v2755_v41, %v2754_v38  ;;  %v5351_v41 = vld [vmem:[%s5742_s8] ss:$0 sm:$0xff] }
 0x18c   :  { %v2757_v44 = vpop.f32.mrb[20].mxu0  ;;  %v5296_v47 = vadd.f32 %v2756_v42, %v468_v1 }
 0x18d   :  { %v2758_v50 = vpop.f32.mrb[21].mxu0 }
 0x18e   :  { %v2759_v51 = vadd.f32 %v2758_v50, %v2757_v44 }
 0x190   :  { %v2760_v54 = vpop.f32.mrb[22].mxu0  ;;  %v5298_v55 = vadd.f32 %v2759_v51, %v473_v16 }
 0x191   :  { %v2761_v58 = vpop.f32.mrb[23].mxu0 }
 0x192   :  { %v2762_v59 = vadd.f32 %v2761_v58, %v2760_v54 }
 0x194   :  { %v2763_v2 = vpop.f32.mrb[24].mxu0  ;;  %v5300_v33 = vadd.f32 %v2762_v59, %v478_v32 }
 0x195   :  { %v2764_v4 = vpop.f32.mrb[25].mxu0 }
 0x196   :  { %v2765_v6 = vadd.f32 %v2764_v4, %v2763_v2 }
 0x198   :  { %v2766_v8 = vpop.f32.mrb[26].mxu0  ;;  %v5302_v9 = vadd.f32 %v2765_v6, %v483_v45 }
 0x199   :  { %v2767_v48 = vpop.f32.mrb[27].mxu0 }
 0x19a   :  { %v2768_v12 = vadd.f32 %v2767_v48, %v2766_v8 }
 0x19c   :  { %v2769_v13 = vpop.f32.mrb[28].mxu0  ;;  %v5304_v1 = vadd.f32 %v2768_v12, %v488_v62 }
 0x19d   :  { %v2770_v19 = vpop.f32.mrb[29].mxu0 }
 0x19e   :  { %v2771_v21 = vadd.f32 %v2770_v19, %v2769_v13  ;;  %v702_v62 = vpop.f32.mrb[16].mxu1  ;;  %v894_v19 = vpop.permute.xlu0 %893 }
 0x19f   :  { %vm895_vm4 = vcmp.eq.s32.totalorder %v894_v19, 1 }
 0x1a0   :  { %v2772_v23 = vpop.f32.mrb[30].mxu0  ;;  %v5306_v16 = vadd.f32 %v2771_v21, %v493_v17  ;;  %v3234_v17 = vpop.f32.mrb[17].mxu1 }
 0x1a1   :  { %v2773_v24 = vpop.f32.mrb[31].mxu0 }
 0x1a2   :  { %v2774_v27 = vadd.f32 %v2773_v24, %v2772_v23  ;;  %v618_v23 = vld [vmem:[#allocation5] sm:$0xff] }
 0x1a4   :  { %v788_v31 = vpop.f32.mrb[32].mxu0  ;;  %v5308_v32 = vadd.f32 %v2774_v27, %v498_v35  ;;  %v1116_v35 = vsel %vm1115_vm2, 1, %v5005_v28 }
 0x1a5   :  { %v792_v36 = vadd.f32 %v788_v31, %v568_v39  ;;  %v3269_v38 = vpop.f32.mrb[33].mxu0  ;;  %1118 = vperm.xlu0 %4789, %v1116_v35  }
 0x1a7   :  { %4791 = vtanh.f32 %v792_v36 }
 0x1b1   :  { %v4792_v45 = vpop.eup %4791 }
 0x1b2   :  { %3303 = vmatmul.mubr.f32.vlgmr.msra.gmra.mrb[18].mxu1 %v4792_v45 }
 0x1b3   :  { %4269 = vmatpush3.bf16.msra.mxu1 %v5163_v57  ;;  %3372 = vmatprep.mubr.msk.f32.mxu1 %vm5003_vm0, %v5004_v61 }
 0x1b4   :  { %4270 = vmatprep.subr.bf16.mxu1 %v5002_v52 }
 0x1b7   :  { %4272 = vmatpush3.bf16.msra.mxu1 %v5169_v63 }
 0x1b8   :  { %4273 = vmatprep.subr.bf16.mxu1 %v5002_v52 }
 0x1bb   :  { %4275 = vmatpush3.bf16.msra.mxu1 %v5173_v5 }
 0x1bc   :  { %4276 = vmatprep.subr.bf16.mxu1 %v5002_v52 }
 0x1bf   :  { %4278 = vmatpush3.bf16.msra.mxu1 %v5177_v10 }
 0x1c0   :  { %4279 = vmatprep.subr.bf16.mxu1 %v5002_v52 }
 0x1c3   :  { %4281 = vmatpush3.bf16.msra.mxu1 %v5181_v15 }
 0x1c4   :  { %4282 = vmatprep.subr.bf16.mxu1 %v5002_v52 }
 0x1c7   :  { %4284 = vmatpush3.bf16.msra.mxu1 %v5185_v20 }
 0x1c8   :  { %4285 = vmatprep.subr.bf16.mxu1 %v5002_v52 }
 0x1cb   :  { %4287 = vmatpush3.bf16.msra.mxu1 %v5189_v25 }
 0x1cc   :  { %4288 = vmatprep.subr.bf16.mxu1 %v5002_v52 }
 0x1cf   :  { %4290 = vmatpush3.bf16.msra.mxu1 %v5193_v30 }
 0x1d0   :  { %4315 = vmatprep.subr.bf16.mxu1 %v5002_v52 }
 0x1d2   :  { %3373 = vmatmul.mubr.f32.vlgmr.msra.gmra.mrb[20].mxu1 %v4792_v45 }
 0x1d3   :  { %4317 = vmatpush3.bf16.msra.mxu1 %v5202_v34  ;;  %3442 = vmatprep.mubr.msk.f32.mxu1 %vm5003_vm0, %v5004_v61 }
 0x1d4   :  { %4318 = vmatprep.subr.bf16.mxu1 %v5002_v52 }
 0x1d7   :  { %4320 = vmatpush3.bf16.msra.mxu1 %v5208_v37 }
 0x1d8   :  { %4321 = vmatprep.subr.bf16.mxu1 %v5002_v52 }
 0x1db   :  { %4323 = vmatpush3.bf16.msra.mxu1 %v5214_v40 }
 0x1dc   :  { %4324 = vmatprep.subr.bf16.mxu1 %v5002_v52 }
 0x1df   :  { %4326 = vmatpush3.bf16.msra.mxu1 %v5220_v43 }
 0x1e0   :  { %4327 = vmatprep.subr.bf16.mxu1 %v5002_v52 }
 0x1e3   :  { %4329 = vmatpush3.bf16.msra.mxu1 %v5226_v46 }
 0x1e4   :  { %4330 = vmatprep.subr.bf16.mxu1 %v5002_v52 }
 0x1e7   :  { %4332 = vmatpush3.bf16.msra.mxu1 %v5232_v49 }
 0x1e8   :  { %4333 = vmatprep.subr.bf16.mxu1 %v5002_v52 }
 0x1eb   :  { %4335 = vmatpush3.bf16.msra.mxu1 %v5238_v53 }
 0x1ec   :  { %4336 = vmatprep.subr.bf16.mxu1 %v5002_v52 }
 0x1ef   :  { %4338 = vmatpush3.bf16.msra.mxu1 %v5244_v56 }
 0x1f0   :  { %4363 = vmatprep.subr.bf16.mxu1 %v5002_v52 }
 0x224   :  { %v1119_v21 = vpop.permute.xlu0 %1118 }
 0x225   :  { %vm1120_vm5 = vcmp.eq.s32.totalorder %v1119_v21, 1 }
 0x285   :  { %v876_v39 = vpop.f32.mrb[18].mxu1 }
 0x286   :  { %v877_v42 = vadd.f32 %v876_v39, %v702_v62  ;;  %v3304_v44 = vpop.f32.mrb[19].mxu1 }
 0x288   :  { %v887_v50 = vadd.f32 %v5351_v41, %v877_v42 }
 0x28a   :  { %4793 = vtanh.f32 %v887_v50 }
 0x294   :  { %v5354_v51 = vpop.eup %4793 }
 0x295   :  { %3338 = vmatmul.mubr.f32.vlgmr.msra.gmra.mrb[34].mxu0 %v5354_v51  ;;  %v896_v27 = vsel %vm895_vm4, %v5354_v51, %v618_v23 }
 0x296   :  { %4293 = vmatpush3.bf16.msra.mxu0 %v5250_v60  ;;  %3407 = vmatprep.mubr.msk.f32.mxu0 %vm5003_vm0, %v5004_v61 }
 0x297   :  { %4294 = vmatprep.subr.bf16.mxu0 %v5002_v52 }
 0x29a   :  { %4296 = vmatpush3.bf16.msra.mxu0 %v5256_v3 }
 0x29b   :  { %4297 = vmatprep.subr.bf16.mxu0 %v5002_v52 }
 0x29e   :  { %4299 = vmatpush3.bf16.msra.mxu0 %v5260_v7 }
 0x29f   :  { %4300 = vmatprep.subr.bf16.mxu0 %v5002_v52 }
 0x2a2   :  { %4302 = vmatpush3.bf16.msra.mxu0 %v5264_v11 }
 0x2a3   :  { %4303 = vmatprep.subr.bf16.mxu0 %v5002_v52 }
 0x2a5   :  { %v1035_v54 = vpop.f32.mrb[20].mxu1 }
 0x2a6   :  { %v1039_v58 = vadd.f32 %v1035_v54, %v5296_v47  ;;  %v3374_v59 = vpop.f32.mrb[21].mxu1  ;;  %4305 = vmatpush3.bf16.msra.mxu0 %v5268_v14  ;;  %v1341_v47 = vsel %vm1340_vm3, 1, %v5005_v28 }
 0x2a7   :  { %4306 = vmatprep.subr.bf16.mxu0 %v5002_v52  ;;  %1343 = vperm.xlu1 %4790, %v1341_v47  }
 0x2a8   :  { %4795 = vtanh.f32 %v1039_v58 }
 0x2aa   :  { %4308 = vmatpush3.bf16.msra.mxu0 %v5272_v18 }
 0x2ab   :  { %4309 = vmatprep.subr.bf16.mxu0 %v5002_v52 }
 0x2ae   :  { %4311 = vmatpush3.bf16.msra.mxu0 %v5276_v22 }
 0x2af   :  { %4312 = vmatprep.subr.bf16.mxu0 %v5002_v52 }
 0x2b2   :  { %4314 = vmatpush3.bf16.msra.mxu0 %v5279_v26  ;;  %v4796_v2 = vpop.eup %4795 }
 0x2b3   :  { %4339 = vmatprep.subr.bf16.mxu0 %v5002_v52 }
 0x2b5   :  { %3408 = vmatmul.mubr.f32.vlgmr.msra.gmra.mrb[36].mxu0 %v4796_v2 }
 0x2b6   :  { %4341 = vmatpush3.bf16.msra.mxu0 %v5163_v57  ;;  %3477 = vmatprep.mubr.msk.f32.mxu0 %vm5003_vm0, %v5004_v61 }
 0x2b7   :  { %4342 = vmatprep.subr.bf16.mxu0 %v5002_v52 }
 0x2ba   :  { %4344 = vmatpush3.bf16.msra.mxu0 %v5169_v63 }
 0x2bb   :  { %4345 = vmatprep.subr.bf16.mxu0 %v5002_v52 }
 0x2be   :  { %4347 = vmatpush3.bf16.msra.mxu0 %v5173_v5 }
 0x2bf   :  { %4348 = vmatprep.subr.bf16.mxu0 %v5002_v52 }
 0x2c2   :  { %4350 = vmatpush3.bf16.msra.mxu0 %v5177_v10 }
 0x2c3   :  { %4351 = vmatprep.subr.bf16.mxu0 %v5002_v52 }
 0x2c6   :  { %4353 = vmatpush3.bf16.msra.mxu0 %v5181_v15 }
 0x2c7   :  { %4354 = vmatprep.subr.bf16.mxu0 %v5002_v52 }
 0x2ca   :  { %4356 = vmatpush3.bf16.msra.mxu0 %v5185_v20 }
 0x2cb   :  { %4357 = vmatprep.subr.bf16.mxu0 %v5002_v52 }
 0x2ce   :  { %4359 = vmatpush3.bf16.msra.mxu0 %v5189_v25 }
 0x2cf   :  { %4360 = vmatprep.subr.bf16.mxu0 %v5002_v52 }
 0x2d2   :  { %4362 = vmatpush3.bf16.msra.mxu0 %v5193_v30 }
 0x2d3   :  { %4387 = vmatprep.subr.bf16.mxu0 %v5002_v52 }
 0x2d5   :  { %3478 = vmatmul.mubr.f32.vlgmr.msra.gmra.mrb[38].mxu0 %v4796_v2 }
 0x2d6   :  { %4389 = vmatpush3.bf16.msra.mxu0 %v5202_v34  ;;  %3547 = vmatprep.mubr.msk.f32.mxu0 %vm5003_vm0, %v5004_v61 }
 0x2d7   :  { %4390 = vmatprep.subr.bf16.mxu0 %v5002_v52 }
 0x2da   :  { %4392 = vmatpush3.bf16.msra.mxu0 %v5208_v37 }
 0x2db   :  { %4393 = vmatprep.subr.bf16.mxu0 %v5002_v52 }
 0x2de   :  { %4395 = vmatpush3.bf16.msra.mxu0 %v5214_v40 }
 0x2df   :  { %4396 = vmatprep.subr.bf16.mxu0 %v5002_v52 }
 0x2e2   :  { %4398 = vmatpush3.bf16.msra.mxu0 %v5220_v43 }
 0x2e3   :  { %4399 = vmatprep.subr.bf16.mxu0 %v5002_v52 }
 0x2e6   :  { %4401 = vmatpush3.bf16.msra.mxu0 %v5226_v46 }
 0x2e7   :  { %4402 = vmatprep.subr.bf16.mxu0 %v5002_v52 }
 0x2ea   :  { %4404 = vmatpush3.bf16.msra.mxu0 %v5232_v49 }
 0x2eb   :  { %4405 = vmatprep.subr.bf16.mxu0 %v5002_v52 }
 0x2ee   :  { %4407 = vmatpush3.bf16.msra.mxu0 %v5238_v53 }
 0x2ef   :  { %4408 = vmatprep.subr.bf16.mxu0 %v5002_v52 }
 0x2f2   :  { %4410 = vmatpush3.bf16.msra.mxu0 %v5244_v56 }
 0x2f3   :  { %4435 = vmatprep.subr.bf16.mxu0 %v5002_v52 }
 0x326   :  { %v1344_v51 = vpop.permute.xlu1 %1343 }
 0x327   :  { %vm1345_vm7 = vcmp.eq.s32.totalorder %v1344_v51, 1 }
 0x368   :  { %v965_v4 = vpop.f32.mrb[34].mxu0 }
 0x369   :  { %v3339_v6 = vpop.f32.mrb[35].mxu0 }
 0x388   :  { %v1107_v8 = vpop.f32.mrb[36].mxu0 }
 0x389   :  { %v1108_v48 = vadd.f32 %v1107_v8, %v965_v4  ;;  %v3409_v12 = vpop.f32.mrb[37].mxu0 }
 0x38b   :  { %v1111_v13 = vadd.f32 %v5351_v41, %v1108_v48 }
 0x38d   :  { %4797 = vtanh.f32 %v1111_v13 }
 0x397   :  { %v4798_v24 = vpop.eup %4797 }
 0x398   :  { %v5416_v31 = vsel %vm1120_vm5, %v4798_v24, %v896_v27  ;;  %3443 = vmatmul.mubr.f32.vlgmr.msra.gmra.mrb[22].mxu1 %v4798_v24 }
 0x399   :  { %4365 = vmatpush3.bf16.msra.mxu1 %v5250_v60  ;;  %3512 = vmatprep.mubr.msk.f32.mxu1 %vm5003_vm0, %v5004_v61 }
 0x39a   :  { %4366 = vmatprep.subr.bf16.mxu1 %v5002_v52 }
 0x39d   :  { %4368 = vmatpush3.bf16.msra.mxu1 %v5256_v3 }
 0x39e   :  { %4369 = vmatprep.subr.bf16.mxu1 %v5002_v52 }
 0x3a1   :  { %4371 = vmatpush3.bf16.msra.mxu1 %v5260_v7 }
 0x3a2   :  { %4372 = vmatprep.subr.bf16.mxu1 %v5002_v52 }
 0x3a5   :  { %4374 = vmatpush3.bf16.msra.mxu1 %v5264_v11 }
 0x3a6   :  { %4375 = vmatprep.subr.bf16.mxu1 %v5002_v52 }
 0x3a8   :  { %v1260_v36 = vpop.f32.mrb[38].mxu0 }
 0x3a9   :  { %v1264_v38 = vadd.f32 %v1260_v36, %v5298_v55  ;;  %4377 = vmatpush3.bf16.msra.mxu1 %v5268_v14  ;;  %v3479_v45 = vpop.f32.mrb[39].mxu0  ;;  %v1566_v55 = vsel %vm1565_vm6, 1, %v5005_v28 }
 0x3aa   :  { %4378 = vmatprep.subr.bf16.mxu1 %v5002_v52  ;;  %1568 = vperm.xlu1 %4790, %v1566_v55  }
 0x3ab   :  { %4799 = vtanh.f32 %v1264_v38 }
 0x3ad   :  { %4380 = vmatpush3.bf16.msra.mxu1 %v5272_v18 }
 0x3ae   :  { %4381 = vmatprep.subr.bf16.mxu1 %v5002_v52 }
 0x3b1   :  { %4383 = vmatpush3.bf16.msra.mxu1 %v5276_v22 }
 0x3b2   :  { %4384 = vmatprep.subr.bf16.mxu1 %v5002_v52 }
 0x3b5   :  { %v4800_v62 = vpop.eup %4799  ;;  %4386 = vmatpush3.bf16.msra.mxu1 %v5279_v26 }
 0x3b6   :  { %4411 = vmatprep.subr.bf16.mxu1 %v5002_v52 }
 0x3b8   :  { %3513 = vmatmul.mubr.f32.vlgmr.msra.gmra.mrb[24].mxu1 %v4800_v62 }
 0x3b9   :  { %4413 = vmatpush3.bf16.msra.mxu1 %v5163_v57  ;;  %3582 = vmatprep.mubr.msk.f32.mxu1 %vm5003_vm0, %v5004_v61 }
 0x3ba   :  { %4414 = vmatprep.subr.bf16.mxu1 %v5002_v52 }
 0x3bd   :  { %4416 = vmatpush3.bf16.msra.mxu1 %v5169_v63 }
 0x3be   :  { %4417 = vmatprep.subr.bf16.mxu1 %v5002_v52 }
 0x3c1   :  { %4419 = vmatpush3.bf16.msra.mxu1 %v5173_v5 }
 0x3c2   :  { %4420 = vmatprep.subr.bf16.mxu1 %v5002_v52 }
 0x3c5   :  { %4422 = vmatpush3.bf16.msra.mxu1 %v5177_v10 }
 0x3c6   :  { %4423 = vmatprep.subr.bf16.mxu1 %v5002_v52 }
 0x3c9   :  { %4425 = vmatpush3.bf16.msra.mxu1 %v5181_v15 }
 0x3ca   :  { %4426 = vmatprep.subr.bf16.mxu1 %v5002_v52 }
 0x3cd   :  { %4428 = vmatpush3.bf16.msra.mxu1 %v5185_v20 }
 0x3ce   :  { %4429 = vmatprep.subr.bf16.mxu1 %v5002_v52 }
 0x3d1   :  { %4431 = vmatpush3.bf16.msra.mxu1 %v5189_v25 }
 0x3d2   :  { %4432 = vmatprep.subr.bf16.mxu1 %v5002_v52 }
 0x3d5   :  { %4434 = vmatpush3.bf16.msra.mxu1 %v5193_v30 }
 0x3d6   :  { %4459 = vmatprep.subr.bf16.mxu1 %v5002_v52 }
 0x3d8   :  { %3583 = vmatmul.mubr.f32.vlgmr.msra.gmra.mrb[26].mxu1 %v4800_v62 }
 0x3d9   :  { %4461 = vmatpush3.bf16.msra.mxu1 %v5202_v34  ;;  %3652 = vmatprep.mubr.msk.f32.mxu1 %vm5003_vm0, %v5004_v61 }
 0x3da   :  { %4462 = vmatprep.subr.bf16.mxu1 %v5002_v52 }
 0x3dd   :  { %4464 = vmatpush3.bf16.msra.mxu1 %v5208_v37 }
 0x3de   :  { %4465 = vmatprep.subr.bf16.mxu1 %v5002_v52 }
 0x3e1   :  { %4467 = vmatpush3.bf16.msra.mxu1 %v5214_v40 }
 0x3e2   :  { %4468 = vmatprep.subr.bf16.mxu1 %v5002_v52 }
 0x3e5   :  { %4470 = vmatpush3.bf16.msra.mxu1 %v5220_v43 }
 0x3e6   :  { %4471 = vmatprep.subr.bf16.mxu1 %v5002_v52 }
 0x3e9   :  { %4473 = vmatpush3.bf16.msra.mxu1 %v5226_v46 }
 0x3ea   :  { %4474 = vmatprep.subr.bf16.mxu1 %v5002_v52 }
 0x3ed   :  { %4476 = vmatpush3.bf16.msra.mxu1 %v5232_v49 }
 0x3ee   :  { %4477 = vmatprep.subr.bf16.mxu1 %v5002_v52 }
 0x3f1   :  { %4479 = vmatpush3.bf16.msra.mxu1 %v5238_v53 }
 0x3f2   :  { %4480 = vmatprep.subr.bf16.mxu1 %v5002_v52 }
 0x3f5   :  { %4482 = vmatpush3.bf16.msra.mxu1 %v5244_v56 }
 0x3f6   :  { %4507 = vmatprep.subr.bf16.mxu1 %v5002_v52 }
 0x429   :  { %v1569_v21 = vpop.permute.xlu1 %1568 }
 0x42a   :  { %vm1570_vm9 = vcmp.eq.s32.totalorder %v1569_v21, 1 }
 0x46b   :  { %v1190_v17 = vpop.f32.mrb[22].mxu1 }
 0x46c   :  { %v3444_v35 = vpop.f32.mrb[23].mxu1 }
 0x48b   :  { %v1332_v39 = vpop.f32.mrb[24].mxu1 }
 0x48c   :  { %v1333_v42 = vadd.f32 %v1332_v39, %v1190_v17  ;;  %v3514_v44 = vpop.f32.mrb[25].mxu1 }
 0x48e   :  { %v1336_v50 = vadd.f32 %v5351_v41, %v1333_v42 }
 0x490   :  { %4801 = vtanh.f32 %v1336_v50 }
 0x49a   :  { %v4802_v54 = vpop.eup %4801 }
 0x49b   :  { %v5477_v58 = vsel %vm1345_vm7, %v4802_v54, %v5416_v31  ;;  %3548 = vmatmul.mubr.f32.vlgmr.msra.gmra.mrb[40].mxu0 %v4802_v54 }
 0x49c   :  { %4437 = vmatpush3.bf16.msra.mxu0 %v5250_v60  ;;  %3617 = vmatprep.mubr.msk.f32.mxu0 %vm5003_vm0, %v5004_v61 }
 0x49d   :  { %4438 = vmatprep.subr.bf16.mxu0 %v5002_v52 }
 0x4a0   :  { %4440 = vmatpush3.bf16.msra.mxu0 %v5256_v3 }
 0x4a1   :  { %4441 = vmatprep.subr.bf16.mxu0 %v5002_v52 }
 0x4a4   :  { %4443 = vmatpush3.bf16.msra.mxu0 %v5260_v7 }
 0x4a5   :  { %4444 = vmatprep.subr.bf16.mxu0 %v5002_v52 }
 0x4a8   :  { %4446 = vmatpush3.bf16.msra.mxu0 %v5264_v11 }
 0x4a9   :  { %4447 = vmatprep.subr.bf16.mxu0 %v5002_v52 }
 0x4ab   :  { %v1485_v59 = vpop.f32.mrb[26].mxu1 }
 0x4ac   :  { %v1489_v2 = vadd.f32 %v1485_v59, %v5300_v33  ;;  %4449 = vmatpush3.bf16.msra.mxu0 %v5268_v14  ;;  %v3584_v47 = vpop.f32.mrb[27].mxu1  ;;  %v1791_v33 = vsel %vm1790_vm8, 1, %v5005_v28 }
 0x4ad   :  { %4450 = vmatprep.subr.bf16.mxu0 %v5002_v52  ;;  %1793 = vperm.xlu0 %4789, %v1791_v33  }
 0x4ae   :  { %4803 = vtanh.f32 %v1489_v2 }
 0x4b0   :  { %4452 = vmatpush3.bf16.msra.mxu0 %v5272_v18 }
 0x4b1   :  { %4453 = vmatprep.subr.bf16.mxu0 %v5002_v52 }
 0x4b4   :  { %4455 = vmatpush3.bf16.msra.mxu0 %v5276_v22 }
 0x4b5   :  { %4456 = vmatprep.subr.bf16.mxu0 %v5002_v52 }
 0x4b8   :  { %v4804_v4 = vpop.eup %4803  ;;  %4458 = vmatpush3.bf16.msra.mxu0 %v5279_v26 }
 0x4b9   :  { %4483 = vmatprep.subr.bf16.mxu0 %v5002_v52 }
 0x4bb   :  { %3618 = vmatmul.mubr.f32.vlgmr.msra.gmra.mrb[42].mxu0 %v4804_v4 }
 0x4bc   :  { %4485 = vmatpush3.bf16.msra.mxu0 %v5163_v57  ;;  %3687 = vmatprep.mubr.msk.f32.mxu0 %vm5003_vm0, %v5004_v61 }
 0x4bd   :  { %4486 = vmatprep.subr.bf16.mxu0 %v5002_v52 }
 0x4c0   :  { %4488 = vmatpush3.bf16.msra.mxu0 %v5169_v63 }
 0x4c1   :  { %4489 = vmatprep.subr.bf16.mxu0 %v5002_v52 }
 0x4c4   :  { %4491 = vmatpush3.bf16.msra.mxu0 %v5173_v5 }
 0x4c5   :  { %4492 = vmatprep.subr.bf16.mxu0 %v5002_v52 }
 0x4c8   :  { %4494 = vmatpush3.bf16.msra.mxu0 %v5177_v10 }
 0x4c9   :  { %4495 = vmatprep.subr.bf16.mxu0 %v5002_v52 }
 0x4cc   :  { %4497 = vmatpush3.bf16.msra.mxu0 %v5181_v15 }
 0x4cd   :  { %4498 = vmatprep.subr.bf16.mxu0 %v5002_v52 }
 0x4d0   :  { %4500 = vmatpush3.bf16.msra.mxu0 %v5185_v20 }
 0x4d1   :  { %4501 = vmatprep.subr.bf16.mxu0 %v5002_v52 }
 0x4d4   :  { %4503 = vmatpush3.bf16.msra.mxu0 %v5189_v25 }
 0x4d5   :  { %4504 = vmatprep.subr.bf16.mxu0 %v5002_v52 }
 0x4d8   :  { %4506 = vmatpush3.bf16.msra.mxu0 %v5193_v30 }
 0x4d9   :  { %4531 = vmatprep.subr.bf16.mxu0 %v5002_v52 }
 0x4db   :  { %3688 = vmatmul.mubr.f32.vlgmr.msra.gmra.mrb[44].mxu0 %v4804_v4 }
 0x4dc   :  { %4533 = vmatpush3.bf16.msra.mxu0 %v5202_v34  ;;  %3757 = vmatprep.mubr.msk.f32.mxu0 %vm5003_vm0, %v5004_v61 }
 0x4dd   :  { %4534 = vmatprep.subr.bf16.mxu0 %v5002_v52 }
 0x4e0   :  { %4536 = vmatpush3.bf16.msra.mxu0 %v5208_v37 }
 0x4e1   :  { %4537 = vmatprep.subr.bf16.mxu0 %v5002_v52 }
 0x4e4   :  { %4539 = vmatpush3.bf16.msra.mxu0 %v5214_v40 }
 0x4e5   :  { %4540 = vmatprep.subr.bf16.mxu0 %v5002_v52 }
 0x4e8   :  { %4542 = vmatpush3.bf16.msra.mxu0 %v5220_v43 }
 0x4e9   :  { %4543 = vmatprep.subr.bf16.mxu0 %v5002_v52 }
 0x4ec   :  { %4545 = vmatpush3.bf16.msra.mxu0 %v5226_v46 }
 0x4ed   :  { %4546 = vmatprep.subr.bf16.mxu0 %v5002_v52 }
 0x4f0   :  { %4548 = vmatpush3.bf16.msra.mxu0 %v5232_v49 }
 0x4f1   :  { %4549 = vmatprep.subr.bf16.mxu0 %v5002_v52 }
 0x4f4   :  { %4551 = vmatpush3.bf16.msra.mxu0 %v5238_v53 }
 0x4f5   :  { %4552 = vmatprep.subr.bf16.mxu0 %v5002_v52 }
 0x4f8   :  { %4554 = vmatpush3.bf16.msra.mxu0 %v5244_v56 }
 0x4f9   :  { %4579 = vmatprep.subr.bf16.mxu0 %v5002_v52 }
 0x52c   :  { %v1794_v42 = vpop.permute.xlu0 %1793 }
 0x52d   :  { %vm1795_vm11 = vcmp.eq.s32.totalorder %v1794_v42, 1 }
 0x56e   :  { %v1415_v6 = vpop.f32.mrb[40].mxu0 }
 0x56f   :  { %v3549_v8 = vpop.f32.mrb[41].mxu0 }
 0x58e   :  { %v1557_v48 = vpop.f32.mrb[42].mxu0 }
 0x58f   :  { %v1558_v12 = vadd.f32 %v1557_v48, %v1415_v6  ;;  %v3619_v13 = vpop.f32.mrb[43].mxu0 }
 0x591   :  { %v1561_v19 = vadd.f32 %v5351_v41, %v1558_v12 }
 0x593   :  { %4805 = vtanh.f32 %v1561_v19 }
 0x59d   :  { %v4806_v23 = vpop.eup %4805 }
 0x59e   :  { %v5538_v24 = vsel %vm1570_vm9, %v4806_v23, %v5477_v58  ;;  %3653 = vmatmul.mubr.f32.vlgmr.msra.gmra.mrb[28].mxu1 %v4806_v23 }
 0x59f   :  { %4509 = vmatpush3.bf16.msra.mxu1 %v5250_v60  ;;  %3722 = vmatprep.mubr.msk.f32.mxu1 %vm5003_vm0, %v5004_v61 }
 0x5a0   :  { %4510 = vmatprep.subr.bf16.mxu1 %v5002_v52 }
 0x5a3   :  { %4512 = vmatpush3.bf16.msra.mxu1 %v5256_v3 }
 0x5a4   :  { %4513 = vmatprep.subr.bf16.mxu1 %v5002_v52 }
 0x5a7   :  { %4515 = vmatpush3.bf16.msra.mxu1 %v5260_v7 }
 0x5a8   :  { %4516 = vmatprep.subr.bf16.mxu1 %v5002_v52 }
 0x5ab   :  { %4518 = vmatpush3.bf16.msra.mxu1 %v5264_v11 }
 0x5ac   :  { %4519 = vmatprep.subr.bf16.mxu1 %v5002_v52 }
 0x5ae   :  { %v1710_v27 = vpop.f32.mrb[44].mxu0 }
 0x5af   :  { %v1714_v31 = vadd.f32 %v1710_v27, %v5302_v9  ;;  %4521 = vmatpush3.bf16.msra.mxu1 %v5268_v14  ;;  %v3689_v36 = vpop.f32.mrb[45].mxu0  ;;  %v2016_v9 = vsel %vm2015_vm10, 1, %v5005_v28 }
 0x5b0   :  { %4522 = vmatprep.subr.bf16.mxu1 %v5002_v52  ;;  %2018 = vperm.xlu1 %4790, %v2016_v9  }
 0x5b1   :  { %4807 = vtanh.f32 %v1714_v31 }
 0x5b3   :  { %4524 = vmatpush3.bf16.msra.mxu1 %v5272_v18 }
 0x5b4   :  { %4525 = vmatprep.subr.bf16.mxu1 %v5002_v52 }
 0x5b7   :  { %4527 = vmatpush3.bf16.msra.mxu1 %v5276_v22 }
 0x5b8   :  { %4528 = vmatprep.subr.bf16.mxu1 %v5002_v52 }
 0x5bb   :  { %v4808_v38 = vpop.eup %4807  ;;  %4530 = vmatpush3.bf16.msra.mxu1 %v5279_v26 }
 0x5bc   :  { %4555 = vmatprep.subr.bf16.mxu1 %v5002_v52 }
 0x5be   :  { %3723 = vmatmul.mubr.f32.vlgmr.msra.gmra.mrb[30].mxu1 %v4808_v38 }
 0x5bf   :  { %4557 = vmatpush3.bf16.msra.mxu1 %v5163_v57  ;;  %3792 = vmatprep.mubr.msk.f32.mxu1 %vm5003_vm0, %v5004_v61 }
 0x5c0   :  { %4558 = vmatprep.subr.bf16.mxu1 %v5002_v52 }
 0x5c3   :  { %4560 = vmatpush3.bf16.msra.mxu1 %v5169_v63 }
 0x5c4   :  { %4561 = vmatprep.subr.bf16.mxu1 %v5002_v52 }
 0x5c7   :  { %4563 = vmatpush3.bf16.msra.mxu1 %v5173_v5 }
 0x5c8   :  { %4564 = vmatprep.subr.bf16.mxu1 %v5002_v52 }
 0x5cb   :  { %4566 = vmatpush3.bf16.msra.mxu1 %v5177_v10 }
 0x5cc   :  { %4567 = vmatprep.subr.bf16.mxu1 %v5002_v52 }
 0x5cf   :  { %4569 = vmatpush3.bf16.msra.mxu1 %v5181_v15 }
 0x5d0   :  { %4570 = vmatprep.subr.bf16.mxu1 %v5002_v52 }
 0x5d3   :  { %4572 = vmatpush3.bf16.msra.mxu1 %v5185_v20 }
 0x5d4   :  { %4573 = vmatprep.subr.bf16.mxu1 %v5002_v52 }
 0x5d7   :  { %4575 = vmatpush3.bf16.msra.mxu1 %v5189_v25 }
 0x5d8   :  { %4576 = vmatprep.subr.bf16.mxu1 %v5002_v52 }
 0x5db   :  { %4578 = vmatpush3.bf16.msra.mxu1 %v5193_v30 }
 0x5dc   :  { %4603 = vmatprep.subr.bf16.mxu1 %v5002_v52 }
 0x5de   :  { %3793 = vmatmul.mubr.f32.vlgmr.msra.gmra.mrb[32].mxu1 %v4808_v38 }
 0x5df   :  { %4605 = vmatpush3.bf16.msra.mxu1 %v5202_v34  ;;  %3862 = vmatprep.mubr.msk.f32.mxu1 %vm5003_vm0, %v5004_v61 }
 0x5e0   :  { %4606 = vmatprep.subr.bf16.mxu1 %v5002_v52 }
 0x5e3   :  { %4608 = vmatpush3.bf16.msra.mxu1 %v5208_v37 }
 0x5e4   :  { %4609 = vmatprep.subr.bf16.mxu1 %v5002_v52 }
 0x5e7   :  { %4611 = vmatpush3.bf16.msra.mxu1 %v5214_v40 }
 0x5e8   :  { %4612 = vmatprep.subr.bf16.mxu1 %v5002_v52 }
 0x5eb   :  { %4614 = vmatpush3.bf16.msra.mxu1 %v5220_v43 }
 0x5ec   :  { %4615 = vmatprep.subr.bf16.mxu1 %v5002_v52 }
 0x5ef   :  { %4617 = vmatpush3.bf16.msra.mxu1 %v5226_v46 }
 0x5f0   :  { %4618 = vmatprep.subr.bf16.mxu1 %v5002_v52 }
 0x5f3   :  { %4620 = vmatpush3.bf16.msra.mxu1 %v5232_v49 }
 0x5f4   :  { %4621 = vmatprep.subr.bf16.mxu1 %v5002_v52 }
 0x5f7   :  { %4623 = vmatpush3.bf16.msra.mxu1 %v5238_v53 }
 0x5f8   :  { %4624 = vmatprep.subr.bf16.mxu1 %v5002_v52 }
 0x5fb   :  { %4626 = vmatpush3.bf16.msra.mxu1 %v5244_v56 }
 0x5fc   :  { %4651 = vmatprep.subr.bf16.mxu1 %v5002_v52 }
 0x671   :  { %v1640_v45 = vpop.f32.mrb[28].mxu1 }
 0x672   :  { %v3654_v62 = vpop.f32.mrb[29].mxu1 }
 0x691   :  { %v1782_v55 = vpop.f32.mrb[30].mxu1 }
 0x692   :  { %v1783_v17 = vadd.f32 %v1782_v55, %v1640_v45  ;;  %v3724_v35 = vpop.f32.mrb[31].mxu1 }
 0x694   :  { %v1786_v39 = vadd.f32 %v5351_v41, %v1783_v17 }
 0x696   :  { %4809 = vtanh.f32 %v1786_v39 }
 0x6a0   :  { %v4810_v44 = vpop.eup %4809 }
 0x6a1   :  { %v5599_v50 = vsel %vm1795_vm11, %v4810_v44, %v5538_v24  ;;  %3758 = vmatmul.mubr.f32.vlgmr.msra.gmra.mrb[46].mxu0 %v4810_v44 }
 0x6a2   :  { %4581 = vmatpush3.bf16.msra.mxu0 %v5250_v60  ;;  %3827 = vmatprep.mubr.msk.f32.mxu0 %vm5003_vm0, %v5004_v61 }
 0x6a3   :  { %4582 = vmatprep.subr.bf16.mxu0 %v5002_v52 }
 0x6a6   :  { %4584 = vmatpush3.bf16.msra.mxu0 %v5256_v3 }
 0x6a7   :  { %4585 = vmatprep.subr.bf16.mxu0 %v5002_v52 }
 0x6aa   :  { %4587 = vmatpush3.bf16.msra.mxu0 %v5260_v7 }
 0x6ab   :  { %4588 = vmatprep.subr.bf16.mxu0 %v5002_v52 }
 0x6ae   :  { %4590 = vmatpush3.bf16.msra.mxu0 %v5264_v11 }
 0x6af   :  { %4591 = vmatprep.subr.bf16.mxu0 %v5002_v52 }
 0x6b1   :  { %v1935_v51 = vpop.f32.mrb[32].mxu1 }
 0x6b2   :  { %v1939_v54 = vadd.f32 %v1935_v51, %v5304_v1  ;;  %4593 = vmatpush3.bf16.msra.mxu0 %v5268_v14  ;;  %v3794_v58 = vpop.f32.mrb[33].mxu1 }
 0x6b3   :  { %4594 = vmatprep.subr.bf16.mxu0 %v5002_v52 }
 0x6b4   :  { %4811 = vtanh.f32 %v1939_v54 }
 0x6b6   :  { %4596 = vmatpush3.bf16.msra.mxu0 %v5272_v18 }
 0x6b7   :  { %4597 = vmatprep.subr.bf16.mxu0 %v5002_v52 }
 0x6ba   :  { %4599 = vmatpush3.bf16.msra.mxu0 %v5276_v22 }
 0x6bb   :  { %4600 = vmatprep.subr.bf16.mxu0 %v5002_v52 }
 0x6be   :  { %v4812_v59 = vpop.eup %4811  ;;  %4602 = vmatpush3.bf16.msra.mxu0 %v5279_v26 }
 0x6bf   :  { %4627 = vmatprep.subr.bf16.mxu0 %v5002_v52 }
 0x6c1   :  { %3828 = vmatmul.mubr.f32.vlgmr.msra.gmra.mrb[48].mxu0 %v4812_v59 }
 0x6c2   :  { %4629 = vmatpush3.bf16.msra.mxu0 %v5163_v57  ;;  %3897 = vmatprep.mubr.msk.f32.mxu0 %vm5003_vm0, %v5004_v61 }
 0x6c3   :  { %4630 = vmatprep.subr.bf16.mxu0 %v5002_v52 }
 0x6c6   :  { %4632 = vmatpush3.bf16.msra.mxu0 %v5169_v63 }
 0x6c7   :  { %4633 = vmatprep.subr.bf16.mxu0 %v5002_v52 }
 0x6ca   :  { %4635 = vmatpush3.bf16.msra.mxu0 %v5173_v5 }
 0x6cb   :  { %4636 = vmatprep.subr.bf16.mxu0 %v5002_v52 }
 0x6ce   :  { %4638 = vmatpush3.bf16.msra.mxu0 %v5177_v10 }
 0x6cf   :  { %4639 = vmatprep.subr.bf16.mxu0 %v5002_v52 }
 0x6d2   :  { %4641 = vmatpush3.bf16.msra.mxu0 %v5181_v15 }
 0x6d3   :  { %4642 = vmatprep.subr.bf16.mxu0 %v5002_v52 }
 0x6d6   :  { %4644 = vmatpush3.bf16.msra.mxu0 %v5185_v20 }
 0x6d7   :  { %4645 = vmatprep.subr.bf16.mxu0 %v5002_v52 }
 0x6da   :  { %4647 = vmatpush3.bf16.msra.mxu0 %v5189_v25 }
 0x6db   :  { %4648 = vmatprep.subr.bf16.mxu0 %v5002_v52 }
 0x6de   :  { %4650 = vmatpush3.bf16.msra.mxu0 %v5193_v30 }
 0x6df   :  { %4675 = vmatprep.subr.bf16.mxu0 %v5002_v52 }
 0x6e1   :  { %3898 = vmatmul.mubr.f32.vlgmr.msra.gmra.mrb[50].mxu0 %v4812_v59 }
 0x6e2   :  { %4677 = vmatpush3.bf16.msra.mxu0 %v5202_v34  ;;  %3967 = vmatprep.mubr.msk.f32.mxu0 %vm5003_vm0, %v5004_v61  ;;  %v2241_v34 = vsel %vm2240_vm12, 1, %v5005_v28 }
 0x6e3   :  { %4678 = vmatprep.subr.bf16.mxu0 %v5002_v52  ;;  %2243 = vperm.xlu0 %4789, %v2241_v34  }
 0x6e6   :  { %4680 = vmatpush3.bf16.msra.mxu0 %v5208_v37 }
 0x6e7   :  { %4681 = vmatprep.subr.bf16.mxu0 %v5002_v52 }
 0x6ea   :  { %4683 = vmatpush3.bf16.msra.mxu0 %v5214_v40 }
 0x6eb   :  { %4684 = vmatprep.subr.bf16.mxu0 %v5002_v52 }
 0x6ee   :  { %4686 = vmatpush3.bf16.msra.mxu0 %v5220_v43 }
 0x6ef   :  { %4687 = vmatprep.subr.bf16.mxu0 %v5002_v52 }
 0x6f2   :  { %4689 = vmatpush3.bf16.msra.mxu0 %v5226_v46 }
 0x6f3   :  { %4690 = vmatprep.subr.bf16.mxu0 %v5002_v52 }
 0x6f6   :  { %4692 = vmatpush3.bf16.msra.mxu0 %v5232_v49 }
 0x6f7   :  { %4693 = vmatprep.subr.bf16.mxu0 %v5002_v52 }
 0x6fa   :  { %4695 = vmatpush3.bf16.msra.mxu0 %v5238_v53  ;;  %v2019_v53 = vpop.permute.xlu1 %2018 }
 0x6fb   :  { %4696 = vmatprep.subr.bf16.mxu0 %v5002_v52  ;;  %vm2020_vm13 = vcmp.eq.s32.totalorder %v2019_v53, 1 }
 0x6fe   :  { %4698 = vmatpush3.bf16.msra.mxu0 %v5244_v56 }
 0x6ff   :  { %4723 = vmatprep.subr.bf16.mxu0 %v5002_v52 }
 0x762   :  { %v2244_v8 = vpop.permute.xlu0 %2243 }
 0x763   :  { %vm2245_vm15 = vcmp.eq.s32.totalorder %v2244_v8, 1 }
 0x774   :  { %v1865_v37 = vpop.f32.mrb[46].mxu0 }
 0x775   :  { %v3759_v40 = vpop.f32.mrb[47].mxu0 }
 0x794   :  { %v2007_v43 = vpop.f32.mrb[48].mxu0 }
 0x795   :  { %v2008_v46 = vadd.f32 %v2007_v43, %v1865_v37  ;;  %v3829_v49 = vpop.f32.mrb[49].mxu0 }
 0x797   :  { %v2011_v1 = vadd.f32 %v5351_v41, %v2008_v46 }
 0x799   :  { %4813 = vtanh.f32 %v2011_v1 }
 0x7a3   :  { %v4814_v2 = vpop.eup %4813 }
 0x7a4   :  { %v2021_v56 = vsel %vm2020_vm13, %v4814_v2, %v5599_v50  ;;  %3863 = vmatmul.mubr.f32.vlgmr.msra.gmra.mrb[34].mxu1 %v4814_v2 }
 0x7a5   :  { %4653 = vmatpush3.bf16.msra.mxu1 %v5250_v60  ;;  %3932 = vmatprep.mubr.msk.f32.mxu1 %vm5003_vm0, %v5004_v61 }
 0x7a6   :  { %4654 = vmatprep.subr.bf16.mxu1 %v5002_v52 }
 0x7a9   :  { %4656 = vmatpush3.bf16.msra.mxu1 %v5256_v3 }
 0x7aa   :  { %4657 = vmatprep.subr.bf16.mxu1 %v5002_v52 }
 0x7ad   :  { %4659 = vmatpush3.bf16.msra.mxu1 %v5260_v7 }
 0x7ae   :  { %4660 = vmatprep.subr.bf16.mxu1 %v5002_v52 }
 0x7b1   :  { %4662 = vmatpush3.bf16.msra.mxu1 %v5264_v11 }
 0x7b2   :  { %4663 = vmatprep.subr.bf16.mxu1 %v5002_v52 }
 0x7b4   :  { %v2160_v47 = vpop.f32.mrb[50].mxu0 }
 0x7b5   :  { %v2164_v4 = vadd.f32 %v2160_v47, %v5306_v16  ;;  %4665 = vmatpush3.bf16.msra.mxu1 %v5268_v14  ;;  %v3899_v33 = vpop.f32.mrb[51].mxu0 }
 0x7b6   :  { %4666 = vmatprep.subr.bf16.mxu1 %v5002_v52 }
 0x7b7   :  { %4815 = vtanh.f32 %v2164_v4 }
 0x7b9   :  { %4668 = vmatpush3.bf16.msra.mxu1 %v5272_v18 }
 0x7ba   :  { %4669 = vmatprep.subr.bf16.mxu1 %v5002_v52 }
 0x7bd   :  { %4671 = vmatpush3.bf16.msra.mxu1 %v5276_v22 }
 0x7be   :  { %4672 = vmatprep.subr.bf16.mxu1 %v5002_v52 }
 0x7c1   :  { %v4816_v6 = vpop.eup %4815  ;;  %4674 = vmatpush3.bf16.msra.mxu1 %v5279_v26 }
 0x7c2   :  { %4699 = vmatprep.subr.bf16.mxu1 %v5002_v52 }
 0x7c4   :  { %3933 = vmatmul.mubr.f32.vlgmr.msra.gmra.mrb[36].mxu1 %v4816_v6 }
 0x7c5   :  { %4701 = vmatpush3.bf16.msra.mxu1 %v5163_v57  ;;  %4002 = vmatprep.mubr.msk.f32.mxu1 %vm5003_vm0, %v5004_v61  ;;  %v2466_v57 = vsel %vm2465_vm14, 1, %v5005_v28 }
 0x7c6   :  { %4702 = vmatprep.subr.bf16.mxu1 %v5002_v52  ;;  %2468 = vperm.xlu1 %4790, %v2466_v57  }
 0x7c9   :  { %4704 = vmatpush3.bf16.msra.mxu1 %v5169_v63 }
 0x7ca   :  { %4705 = vmatprep.subr.bf16.mxu1 %v5002_v52 }
 0x7cd   :  { %4707 = vmatpush3.bf16.msra.mxu1 %v5173_v5 }
 0x7ce   :  { %4708 = vmatprep.subr.bf16.mxu1 %v5002_v52 }
 0x7d1   :  { %4710 = vmatpush3.bf16.msra.mxu1 %v5177_v10 }
 0x7d2   :  { %4711 = vmatprep.subr.bf16.mxu1 %v5002_v52 }
 0x7d5   :  { %4713 = vmatpush3.bf16.msra.mxu1 %v5181_v15 }
 0x7d6   :  { %4714 = vmatprep.subr.bf16.mxu1 %v5002_v52 }
 0x7d9   :  { %4716 = vmatpush3.bf16.msra.mxu1 %v5185_v20 }
 0x7da   :  { %4717 = vmatprep.subr.bf16.mxu1 %v5002_v52 }
 0x7dd   :  { %4719 = vmatpush3.bf16.msra.mxu1 %v5189_v25 }
 0x7de   :  { %4720 = vmatprep.subr.bf16.mxu1 %v5002_v52 }
 0x7e1   :  { %4722 = vmatpush3.bf16.msra.mxu1 %v5193_v30 }
 0x7e4   :  { %4003 = vmatmul.mubr.f32.vlgmr.msra.gmra.mrb[38].mxu1 %v4816_v6 }
 0x877   :  { %v2090_v63 = vpop.f32.mrb[34].mxu1 }
 0x878   :  { %v3864_v5 = vpop.f32.mrb[35].mxu1 }
 0x897   :  { %v2232_v10 = vpop.f32.mrb[36].mxu1 }
 0x898   :  { %v2233_v15 = vadd.f32 %v2232_v10, %v2090_v63  ;;  %v3934_v16 = vpop.f32.mrb[37].mxu1 }
 0x89a   :  { %v2236_v20 = vadd.f32 %v5351_v41, %v2233_v15 }
 0x89c   :  { %4817 = vtanh.f32 %v2236_v20 }
 0x8a6   :  { %v4818_v25 = vpop.eup %4817 }
 0x8a7   :  { %v2246_v48 = vsel %vm2245_vm15, %v4818_v25, %v2021_v56  ;;  %3968 = vmatmul.mubr.f32.vlgmr.msra.gmra.mrb[52].mxu0 %v4818_v25 }
 0x8a8   :  { %4725 = vmatpush3.bf16.msra.mxu0 %v5250_v60  ;;  %4037 = vmatprep.mubr.msk.f32.mxu0 %vm5003_vm0, %v5004_v61 }
 0x8a9   :  { %4726 = vmatprep.subr.bf16.mxu0 %v5002_v52 }
 0x8ac   :  { %4728 = vmatpush3.bf16.msra.mxu0 %v5256_v3 }
 0x8ad   :  { %4729 = vmatprep.subr.bf16.mxu0 %v5002_v52 }
 0x8b0   :  { %4731 = vmatpush3.bf16.msra.mxu0 %v5260_v7 }
 0x8b1   :  { %4732 = vmatprep.subr.bf16.mxu0 %v5002_v52 }
 0x8b4   :  { %4734 = vmatpush3.bf16.msra.mxu0 %v5264_v11 }
 0x8b5   :  { %4735 = vmatprep.subr.bf16.mxu0 %v5002_v52 }
 0x8b7   :  { %v2385_v30 = vpop.f32.mrb[38].mxu1 }
 0x8b8   :  { %v2389_v60 = vadd.f32 %v2385_v30, %v5308_v32  ;;  %4737 = vmatpush3.bf16.msra.mxu0 %v5268_v14  ;;  %v4004_v61 = vpop.f32.mrb[39].mxu1 }
 0x8b9   :  { %4738 = vmatprep.subr.bf16.mxu0 %v5002_v52 }
 0x8ba   :  { %4819 = vtanh.f32 %v2389_v60 }
 0x8bc   :  { %4740 = vmatpush3.bf16.msra.mxu0 %v5272_v18  ;;  %v2469_v18 = vpop.permute.xlu1 %2468 }
 0x8bd   :  { %4741 = vmatprep.subr.bf16.mxu0 %v5002_v52  ;;  %vm2470_vm0 = vcmp.eq.s32.totalorder %v2469_v18, 1 }
 0x8c0   :  { %4743 = vmatpush3.bf16.msra.mxu0 %v5276_v22 }
 0x8c1   :  { %4744 = vmatprep.subr.bf16.mxu0 %v5002_v52 }
 0x8c4   :  { %v4820_v3 = vpop.eup %4819  ;;  %4746 = vmatpush3.bf16.msra.mxu0 %v5279_v26 }
 0x8c5   :  { %2472 = vst [vmem:[#allocation3] sm:$0xff] %v4820_v3 }
 0x8c7   :  { %4038 = vmatmul.mubr.f32.vlgmr.msra.gmra.mrb[54].mxu0 %v4820_v3 }
 0x97a   :  { %v2315_v7 = vpop.f32.mrb[52].mxu0 }
 0x97b   :  { %v3969_v11 = vpop.f32.mrb[53].mxu0 }
 0x99a   :  { %v2457_v14 = vpop.f32.mrb[54].mxu0 }
 0x99b   :  { %v2458_v28 = vadd.f32 %v2457_v14, %v2315_v7  ;;  %v4039_v29 = vpop.f32.mrb[55].mxu0 }
 0x99d   :  { %v2461_v32 = vadd.f32 %v5351_v41, %v2458_v28 }
 0x99f   :  { %4821 = vtanh.f32 %v2461_v32 }
 0x9a9   :  { %v4822_v12 = vpop.eup %4821 }
 0x9aa   :  { %2473 = vst [vmem:[#allocation4] sm:$0xff] %v4822_v12  ;;  %v2471_v22 = vsel %vm2470_vm0, %v4822_v12, %v2246_v48 }
 0x9ab   :  { %2474 = vst [vmem:[#allocation5] sm:$0xff] %v2471_v22 }
 0x9ac PF:  { %v2479_v52 = vld [vmem:[#allocation17] sm:$0xff]  ;;  %v2480_v13 = vld [vmem:[#allocation17 + $0x8] sm:$0xff]  ;;  %v2481_v26 = vld [vmem:[#allocation17 + $0x10] sm:$0xff]  ;;  %v5006_v19 = vmov 0.0|0.0   ;;  %vm5007_vm1 = vmmov 0   ;;  %s5008_s13 = smov [#allocation19]  }
 0x9ad   :  { %4747 = vmatprep.subr.bf16.mxu0 %v5006_v19  ;;  %v4748_v21 = vpack.c.bf16 %v2480_v13, %v2479_v52  ;;  %v2482_v23 = vld [vmem:[#allocation17 + $0x18] sm:$0xff]  ;;  %4072 = vmatprep.mubr.msk.f32.mxu0 %vm5007_vm1, %v5001_v0  ;;  %v2483_v24 = vld [vmem:[#allocation17 + $0x20] sm:$0xff]  ;;  %v2484_v27 = vld [vmem:[#allocation17 + $0x28] sm:$0xff]  ;;  %s2589_s19 = sshll.u32 %s5008_s13, 4  ;;  %s2590_s19 = int_to_ptr.vmem [resolvable:$true] %s2589_s19 }
 0x9ae   :  { %v4751_v41 = vpack.c.bf16 %v2482_v23, %v2481_v26  ;;  %v4754_v31 = vpack.c.bf16 %v2484_v27, %v2483_v24  ;;  %v2485_v36 = vld [vmem:[#allocation17 + $0x30] sm:$0xff]  ;;  %v2486_v38 = vld [vmem:[#allocation17 + $0x38] sm:$0xff]  ;;  %v2487_v45 = vld [vmem:[#allocation17 + $0x40] sm:$0xff]  ;;  %p4964_p8 = scmp.lt.s32.totalorder %s2590_s19, %s2590_s19 }
 0x9af   :  { %4749 = vmatpush3.bf16.msra.mxu0 %v4748_v21  ;;  %v4757_v9 = vpack.c.bf16 %v2486_v38, %v2485_v36  ;;  %v2488_v62 = vld [vmem:[#allocation17 + $0x48] sm:$0xff]  ;;  %v2489_v17 = vld [vmem:[#allocation17 + $0x50] sm:$0xff]  ;;  %v2490_v0 = vld [vmem:[#allocation17 + $0x58] sm:$0xff] }
 0x9b0   :  { %4750 = vmatprep.subr.bf16.mxu0 %v5006_v19  ;;  %v4760_v55 = vpack.c.bf16 %v2488_v62, %v2487_v45  ;;  %v4763_v35 = vpack.c.bf16 %v2490_v0, %v2489_v17  ;;  %v2491_v39 = vld [vmem:[#allocation17 + $0x60] sm:$0xff]  ;;  %v2492_v42 = vld [vmem:[#allocation17 + $0x68] sm:$0xff]  ;;  %v2493_v50 = vld [vmem:[#allocation17 + $0x70] sm:$0xff] }
 0x9b1   :  { %v4766_v44 = vpack.c.bf16 %v2492_v42, %v2491_v39  ;;  %v2494_v51 = vld [vmem:[#allocation17 + $0x78] sm:$0xff]  ;;  %v2606_v59 = vld [vmem:[%s5744_s10] ss:$0 sm:$0xff]  ;;  %s4959_s10 = scalar_lea.vmem %s2590_s19, 128 }
 0x9b2   :  { %v4769_v54 = vpack.c.bf16 %v2494_v51, %v2493_v50  ;;  %v2478_v58 = vld [vmem:[#allocation5] sm:$0xff]  ;;  %p4960_p7 = scmp.ne.s32.totalorder %s2590_s19, %s4959_s10  ;;  %p4965_p9 = scmp.lt.s32.totalorder %s4959_s10, %s4959_s10 }
 0x9b3   :  { %4752 = vmatpush3.bf16.msra.mxu0 %v4751_v41 }
 0x9b4   :  { %4753 = vmatprep.subr.bf16.mxu0 %v5006_v19  ;;  %p4966_p10 = por %p4965_p9, %p4964_p8 }
 0x9b6   :  { %p4967_p11 = pnand %p4966_p10, %p4960_p7 }
 0x9b7   :  { %4755 = vmatpush3.bf16.msra.mxu0 %v4754_v31 }
 0x9b8   :  { %4756 = vmatprep.subr.bf16.mxu0 %v5006_v19 }
 0x9bb   :  { %4758 = vmatpush3.bf16.msra.mxu0 %v4757_v9 }
 0x9bc   :  { %4759 = vmatprep.subr.bf16.mxu0 %v5006_v19 }
 0x9bf   :  { %4761 = vmatpush3.bf16.msra.mxu0 %v4760_v55 }
 0x9c0   :  { %4762 = vmatprep.subr.bf16.mxu0 %v5006_v19 }
 0x9c3   :  { %4764 = vmatpush3.bf16.msra.mxu0 %v4763_v35 }
 0x9c4   :  { %4765 = vmatprep.subr.bf16.mxu0 %v5006_v19 }
 0x9c7   :  { %4767 = vmatpush3.bf16.msra.mxu0 %v4766_v44 }
 0x9c8   :  { %4768 = vmatprep.subr.bf16.mxu0 %v5006_v19 }
 0x9cb   :  { %4770 = vmatpush3.bf16.msra.mxu0 %v4769_v54 }
 0x9ce   :  { %4073 = vmatmul.mubr.f32.vlgmr.msra.gmra.mrb[0].mxu0 %v2478_v58 }
 0xaa1   :  { %v2568_v34 = vpop.f32.mrb[0].mxu0 }
 0xaa2   :  { %v2569_v37 = vadd.f32 %v2606_v59, %v2568_v34  ;;  %v4074_v40 = vpop.f32.mrb[1].mxu0 }
 0xaa4   :  { %2572 = vmax.xlane.f32.xlu0 %v2569_v37 }
 0xb31   :  { %v2573_v43 = vpop.xlane.xlu0 %2572 }
 0xb32   :  { %v2574_v46 = vsub.f32 %v2569_v37, %v2573_v43 }
 0xb34   :  { %v2575_v49 = vmul.f32 1.442695, %v2574_v46 }
 0xb36   :  { %4823 = vpow2.f32 %v2575_v49 }
 0xb40   :  { %v4824_v1 = vpop.eup %4823 }
 0xb41   :  { %2577 = vadd.xlane.f32.xlu0 %v4824_v1 }
 0xbce   :  { %v2578_v53 = vpop.xlane.xlu0 %2577 }
 0xbcf   :  { %4825 = vlog2.f32 %v2578_v53 }
 0xbd9   :  { %v4826_v2 = vpop.eup %4825 }
 0xbda   :  { %v2580_v56 = vmul.f32 0.6931472, %v4826_v2 }
 0xbdc   :  { %v2581_v47 = vsub.f32 %v2574_v46, %v2580_v56 }
 0xbde   :  { %2582 = vst [vmem:[#allocation19] sm:$0xff] %v2581_v47 }
 0xbdf   :  { %4970 = shalt.err (!%p4967_p11)
}
 0xbe0   :  { %s4971_s23 = scalar_lea.hbm %s5745_s11, 128 }
 0xbe1   :  { %p4972_p12 = scmp.ne.s32.totalorder %s5745_s11, %s4971_s23  ;;  %p4975_p13 = scmp.lt.u32.totalorder %s4971_s23, %s5745_s11 }
 0xbe3   :  { %p4977_p0 = pnand %p4975_p13, %p4972_p12 }
 0xbe5   :  { %4980 = shalt.err (!%p4977_p0)
}
 0xbe6   :  { %2592 = dma.vmem_to_hbm [thread:$0]  %s2590_s19, 128, %s5745_s11, [#allocation10]  }
 0xbe7   :  { %4989 = dma.done.wait [#allocation10], 128  }
 0xbe8   :  { %4990 = vsyncadd [#allocation10], 4294967168 }
 0xbe9   :  { %2596 = vsyncpa [#allocation9], 1 }
 0xbea   :  { %2597 = vsyncpa [#allocation12], 1 }
 0xbeb   :  { %2598 = vsyncpa [#allocation15], 1 }
 0xbec   :  { %2599 = vsyncpa [#allocation18], 1 }
 0xbed   :  { %2600 = vsyncpa [#allocation10], 1 }

</bundles_post_ra>
